<compile_context>
chip_gen: v6e
topology: v6e:2x2x1
jax: 0.10.0
libtpu: 0.0.40
codegen_flags: <defaults>
</compile_context>

<pallas_src>
import numpy as np
import jax
import jax.numpy as jnp
from jax.experimental import pallas as pl
from jax.experimental.pallas import tpu as pltpu

LATENT = 32
H_DIM = 576  # 16 * 6 * 6


# ---------------------------------------------------------------------------
# Init-time weight preparation (numpy, runs once; NOT in the forward path).
# Consumes weights in the exact PyTorch layouts.
# ---------------------------------------------------------------------------
def _conv_band_mats(w, w_in, stride):
    """Conv2d weight [Cout, Cin, kh, kw] -> [kh, Cin*w_in, Cout*w_out].

    mats[ki] maps one input image row (lanes = ci*w_in + iw) to the ki-tap
    contribution of one output row (lanes = co*w_out + ow):
        out[co*w_out + ow] += sum_{ci,kj} in[ci*w_in + stride*ow + kj] * w[co,ci,ki,kj]
    """
    cout, cin, kh, kw = w.shape
    w_out = (w_in - kw) // stride + 1
    mats = np.zeros((kh, cin * w_in, cout * w_out), np.float32)
    ci_rows = np.arange(cin)[:, None] * w_in
    co_cols = np.arange(cout)[None, :] * w_out
    for ki in range(kh):
        for kj in range(kw):
            for ow in range(w_out):
                iw = stride * ow + kj
                mats[ki, ci_rows + iw, co_cols + ow] = w[:, :, ki, kj].T
    return mats


def _deconv_band_mats(w, w_in, stride):
    """ConvTranspose2d weight [Cin, Cout, kh, kw] -> [kh, Cin*w_in, Cout*w_out].

    mats[ki] maps one input row to the ki-tap contribution of output row
    oh = stride*ih + ki:
        out[co*w_out + stride*iw + kj] += sum_ci in[ci*w_in + iw] * w[ci,co,ki,kj]
    """
    cin, cout, kh, kw = w.shape
    w_out = (w_in - 1) * stride + kw
    mats = np.zeros((kh, cin * w_in, cout * w_out), np.float32)
    ci_rows = np.arange(cin)[:, None] * w_in
    co_cols = np.arange(cout)[None, :] * w_out
    for ki in range(kh):
        for kj in range(kw):
            for iw in range(w_in):
                ow = stride * iw + kj
                mats[ki, ci_rows + iw, co_cols + ow] = w[:, :, ki, kj]
    return mats


def init_params(key):
    ks = jax.random.split(key, 14)
    s = 0.05

    def rnd(k, shape):
        return np.asarray(jax.random.normal(k, shape, jnp.float32)) * s

    # Raw parameters, PyTorch layouts.
    w1 = rnd(ks[0], (6, 3, 4, 4));    b1 = rnd(ks[1], (6,))      # Conv2d(3,6,4,s=2)
    w2 = rnd(ks[2], (16, 6, 5, 5));   b2 = rnd(ks[3], (16,))     # Conv2d(6,16,5,s=2)
    wmu = rnd(ks[4], (LATENT, H_DIM)); bmu = rnd(ks[5], (LATENT,))
    wlv = rnd(ks[6], (LATENT, H_DIM)); blv = rnd(ks[7], (LATENT,))
    wup = rnd(ks[8], (H_DIM, LATENT)); bup = rnd(ks[9], (H_DIM,))
    wd1 = rnd(ks[10], (16, 6, 5, 5)); bd1 = rnd(ks[11], (6,))    # ConvTranspose2d(16,6,5,s=2)
    wd2 = rnd(ks[12], (6, 3, 4, 4));  bd2 = rnd(ks[13], (3,))    # ConvTranspose2d(6,3,4,s=2)

    m1 = _conv_band_mats(w1, 32, 2)        # [4, 96, 90]
    m2 = _conv_band_mats(w2, 15, 2)        # [5, 90, 96]
    n1 = _deconv_band_mats(wd1, 6, 2)      # [5, 96, 90]
    n2 = _deconv_band_mats(wd2, 15, 2)     # [4, 90, 96]

    # conv1: all 4 taps stacked along K in 128-row blocks -> one dot in-kernel.
    wc1 = np.zeros((512, 128), np.float32)
    for q in range(4):
        wc1[128 * q:128 * q + 96, :90] = m1[q]

    # wk[0..4]  = conv2 taps     (K = h1 lanes 90->128, N = h2 lanes 96->128)
    # wk[5..9]  = deconv1 taps   (K = u lanes 96->128,  N = d1 lanes 90->128)
    # wk[10..15]= mu|logvar head per feature-row (K = h2 lanes, N = 64 -> 128)
    wk = np.zeros((16, 128, 128), np.float32)
    for ki in range(5):
        wk[ki, :90, :96] = m2[ki]
        wk[5 + ki, :96, :90] = n1[ki]
    wmu4 = wmu.reshape(LATENT, 16, 6, 6)
    wlv4 = wlv.reshape(LATENT, 16, 6, 6)
    for r in range(6):
        wk[10 + r, :96, :LATENT] = wmu4[:, :, r, :].reshape(LATENT, 96).T
        wk[10 + r, :96, LATENT:2 * LATENT] = wlv4[:, :, r, :].reshape(LATENT, 96).T

    # deconv2: 4 taps concatenated along N in 128-lane blocks.
    wd2m = np.zeros((128, 512), np.float32)
    for ki in range(4):
        wd2m[:90, 128 * ki:128 * ki + 96] = n2[ki]

    # upsample Linear(L->576) as one wide GEMM: decoder row r in lane block r.
    wup4 = wup.reshape(16, 6, 6, LATENT)
    bup3 = bup.reshape(16, 6, 6)
    wupw = np.zeros((LATENT, 768), np.float32)

    # All biases packed into one f32 operand [6, 768].
    bias = np.zeros((6, 768), np.float32)
    for r in range(6):
        wupw[:, 128 * r:128 * r + 96] = wup4[:, r, :, :].reshape(96, LATENT).T
        bias[3, 128 * r:128 * r + 96] = bup3[:, r, :].reshape(96)
    bias[0, :90] = np.repeat(b1, 15)            # conv1  (lanes co*15+ow)
    bias[1, :96] = np.repeat(b2, 6)             # conv2  (lanes co*6+ow)
    bias[2, :LATENT] = bmu                      # head: mu | logvar
    bias[2, LATENT:2 * LATENT] = blv
    bias[4, :90] = np.repeat(bd1, 15)           # deconv1
    bias[5, :96] = np.repeat(bd2, 32)           # deconv2, lane block p2=0
    bias[5, 128:224] = np.repeat(bd2, 32)       # deconv2, lane block p2=1

    return {
        "wc1": jnp.asarray(wc1, jnp.bfloat16),   # [512, 128]
        "wk": jnp.asarray(wk, jnp.bfloat16),     # [16, 128, 128]
        "wd2": jnp.asarray(wd2m, jnp.bfloat16),  # [128, 512]
        "wup": jnp.asarray(wupw, jnp.bfloat16),  # [32, 768]
        "bias": jnp.asarray(bias, jnp.float32),  # [6, 768]
    }


# ---------------------------------------------------------------------------
# The fused kernel.  All activations are [image_row*B + b, lanes] slabs with
# 128-multiple lane widths; batch is folded into the M dim of every dot.
# ---------------------------------------------------------------------------
def _vae_fused_kernel(xin_ref, eps_ref, wc1_ref, wk_ref, wd2_ref, wup_ref, bias_ref,
                      ydec_ref, mulv_ref, dpad_ref, d1op_ref):
    f32 = jnp.float32
    bf16 = jnp.bfloat16
    B = eps_ref.shape[0]

    def dotf(a, w):
        # bf16 MXU pass, f32 accumulation.
        return jnp.dot(a.astype(bf16), w, preferred_element_type=f32)

    bias = bias_ref[...]                       # [6, 768] f32
    b1 = bias[0:1, 0:128]
    b2 = bias[1:2, 0:128]
    bh = bias[2:3, 0:64]
    bup = bias[3:4, :]
    bd1 = bias[4:5, 0:128]
    bd2 = bias[5:6, 0:256]

    # ------------------------------ encoder ------------------------------
    # conv1 (3x32x32 -> 6x15x15, k=4, s=2): ONE dot.  LHS rows 0..8B-1 are the
    # even output rows (input rows 4t+q in lane block q), rows 8B..15B-1 the
    # odd output rows (input rows 4a+2+q in block q); RHS stacks the 4 taps
    # along K in 128-row blocks, so the dot's contraction sums over taps.
    h1 = jnp.maximum(dotf(xin_ref[...], wc1_ref[...]) + b1, 0.0)   # [15B, 128]
    h1e = h1[0:8 * B]            # conv1 rows 0,2,...,14   (lanes = co*15+ow)
    h1o = h1[8 * B:15 * B]       # conv1 rows 1,3,...,13

    # conv2 (6x15x15 -> 16x6x6, k=5, s=2): 5 dots, M = 6B.
    h2 = dotf(h1e[0:6 * B], wk_ref[0])
    h2 = h2 + dotf(h1o[0:6 * B], wk_ref[1])
    h2 = h2 + dotf(h1e[B:7 * B], wk_ref[2])
    h2 = h2 + dotf(h1o[B:7 * B], wk_ref[3])
    h2 = h2 + dotf(h1e[2 * B:8 * B], wk_ref[4])
    h2 = jnp.maximum(h2 + b2, 0.0)                                 # [6B, 128]

    # ---------------- mu/logvar head (fused) + reparametrize -------------
    acc = dotf(h2[0:B], wk_ref[10])
    for r in range(1, 6):
        acc = acc + dotf(h2[r * B:(r + 1) * B], wk_ref[10 + r])    # [B, 128]
    mulv = acc[:, 0:64] + bh                                       # [B, 64]
    mu = mulv[:, 0:32]
    lv = mulv[:, 32:64]
    z = mu + jnp.exp(0.5 * lv) * eps_ref[...]                      # [B, 32]
    mulv_ref[...] = mulv

    # ------------------------------ decoder ------------------------------
    # upsample Linear(L->576): one dot; lane block r holds decoder row r.
    up = dotf(z, wup_ref[...]) + bup                               # [B, 768]

    # Scatter the 6 rows into a zero-padded scratch (2 pad row-groups on each
    # side for the k=5 deconv).  Only the pad rows are zero-initialised.
    dpad_ref[pl.ds(0, 2 * B), :] = jnp.zeros((2 * B, 128), f32)
    dpad_ref[pl.ds(8 * B, 2 * B), :] = jnp.zeros((2 * B, 128), f32)
    for r in range(6):
        dpad_ref[pl.ds((2 + r) * B, B), :] = up[:, 128 * r:128 * (r + 1)]
    dp = dpad_ref[...]                                             # [10B, 128]

    # deconv1 (16->6, k=5, s=2): stride-1 phase convs, 5 dots.
    d1e = (dotf(dp[2 * B:10 * B], wk_ref[5])
           + dotf(dp[B:9 * B], wk_ref[7])
           + dotf(dp[0:8 * B], wk_ref[9]))
    d1e = jnp.maximum(d1e + bd1, 0.0)            # d1 rows 0,2,...,14  [8B,128]
    d1o = (dotf(dp[2 * B:9 * B], wk_ref[6])
           + dotf(dp[B:8 * B], wk_ref[8]))
    d1o = jnp.maximum(d1o + bd1, 0.0)            # d1 rows 1,3,...,13  [7B,128]

    # Zero-padded odd rows: d1op holds d1 rows [-1, 1, 3, ..., 13, 15].
    d1op_ref[pl.ds(0, B), :] = jnp.zeros((B, 128), f32)
    d1op_ref[pl.ds(8 * B, B), :] = jnp.zeros((B, 128), f32)
    d1op_ref[pl.ds(B, 7 * B), :] = d1o
    d1p = d1op_ref[...]                                            # [9B, 128]
    d1o_front = d1p[0:8 * B]     # d1 rows 2t-1
    d1o_back = d1p[B:9 * B]      # d1 rows 2t+1

    # deconv2 (6->3, k=4, s=2) + tanh: 3 dots, taps concatenated along N.
    #   out rows 4t+0 | 4t+1 = d1e@[ki0|ki1] + d1o_front@[ki2|ki3]
    #   out rows 4t+2 | 4t+3 = d1o_back@[ki0|ki1] + d1e@[ki2|ki3]
    wd2 = wd2_ref[...]                                             # [128, 512]
    r_e = dotf(d1e, wd2)                                           # [8B, 512]
    r_of = dotf(d1o_front, wd2[:, 256:512])                        # [8B, 256]
    r_ob = dotf(d1o_back, wd2[:, 0:256])                           # [8B, 256]
    ydec_ref[0] = jnp.tanh(r_e[:, 0:256] + r_of + bd2)             # rows 4t+{0,1}
    ydec_ref[1] = jnp.tanh(r_e[:, 256:512] + r_ob + bd2)           # rows 4t+{2,3}


# ---------------------------------------------------------------------------
# Wrapper-side layout plumbing (tiny XLA reshapes) + the single pallas_call.
# ---------------------------------------------------------------------------
def _pack_input(x):
    """[B,3,32,32] -> [15B, 512] conv1 LHS (batch folded into rows).

    Rows 0..8B-1: even conv1 output rows, lane block q = input row 4t+q.
    Rows 8B..15B-1: odd conv1 output rows, lane block q = input row 4a+2+q.
    Lane within a 128-block = c*32 + w (96 used, 32 zero pad).
    """
    B = x.shape[0]
    xr = jnp.transpose(x, (2, 0, 1, 3)).reshape(32, B, 96)        # (row, b, c*32+w)
    xr = jnp.pad(xr, ((0, 0), (0, 0), (0, 32)))                   # (row, b, 128)
    even = xr.reshape(8, 4, B, 128).transpose(0, 2, 1, 3).reshape(8 * B, 512)
    odd = xr[2:30].reshape(7, 4, B, 128).transpose(0, 2, 1, 3).reshape(7 * B, 512)
    return jnp.concatenate([even, odd], axis=0)


def _unpack_output(ydec, B):
    """[2, 8B, 256] (e, t*B+b, p2*128 + c*32 + w) -> NCHW [B,3,32,32]."""
    y = ydec.reshape(2, 8, B, 2, 128)[..., :96]
    y = y.reshape(2, 8, B, 2, 3, 32)
    y = jnp.transpose(y, (2, 4, 1, 0, 3, 5))       # (b, c, t, e, p2, w)
    return y.reshape(B, 3, 32, 32)                 # row = 4t + 2e + p2


def image_vae_forward(x_nchw, params, eps):
    """x_nchw: [B,3,32,32] -> (z_decode [B,3,32,32], mu [B,L], logvar [B,L])."""
    B = x_nchw.shape[0]
    f32 = jnp.float32

    xp = _pack_input(x_nchw.astype(f32))           # [15B, 512]
    operands = [xp, eps.astype(f32),
                params["wc1"], params["wk"], params["wd2"], params["wup"],
                params["bias"]]

    def fs(shape):
        return pl.BlockSpec(shape, lambda i: (0,) * len(shape))

    ydec, mulv = pl.pallas_call(
        _vae_fused_kernel,
        out_shape=(jax.ShapeDtypeStruct((2, 8 * B, 256), f32),   # decoder output
                   jax.ShapeDtypeStruct((B, 64), f32)),          # mu | logvar
        grid=(1,),
        in_specs=[fs(op.shape) for op in operands],
        out_specs=(fs((2, 8 * B, 256)), fs((B, 64))),
        scratch_shapes=[pltpu.VMEM((10 * B, 128), f32),          # padded decoder input
                        pltpu.VMEM((9 * B, 128), f32)],          # padded odd d1 rows
        compiler_params=pltpu.CompilerParams(dimension_semantics=("arbitrary",)),
    )(*operands)

    z_decode = _unpack_output(ydec, B)
    mu = mulv[:, :LATENT]
    logvar = mulv[:, LATENT:2 * LATENT]
    return z_decode, mu, logvar


if __name__ == "__main__":
    key = jax.random.PRNGKey(0)
    k_params, k_x, k_eps = jax.random.split(key, 3)

    B = 2
    params = init_params(k_params)
    x = jax.random.normal(k_x, (B, 3, 32, 32), jnp.float32)
    # eps ~ randn_like(std): deterministic noise generated outside the kernel.
    eps = jax.random.normal(k_eps, (B, LATENT), jnp.float32)

    fwd = jax.jit(image_vae_forward)
    z_decode, mu, logvar = fwd(x, params, eps)
    jax.block_until_ready((z_decode, mu, logvar))

    assert z_decode.shape == (B, 3, 32, 32)
    assert mu.shape == (B, LATENT) and logvar.shape == (B, LATENT)
    assert bool(jnp.all(jnp.isfinite(z_decode)))
    print("KERNEL_OK")
</pallas_src>

<mosaic_0001>
module attributes {stable_mosaic.version = 11 : i64} {
  func.func @_vae_fused_kernel(%arg0: i32, %arg1: memref<30x512xf32, #tpu.memory_space<vmem>>, %arg2: memref<2x32xf32, #tpu.memory_space<vmem>>, %arg3: memref<512x128xbf16, #tpu.memory_space<vmem>>, %arg4: memref<16x128x128xbf16, #tpu.memory_space<vmem>>, %arg5: memref<128x512xbf16, #tpu.memory_space<vmem>>, %arg6: memref<32x768xbf16, #tpu.memory_space<vmem>>, %arg7: memref<6x768xf32, #tpu.memory_space<vmem>>, %arg8: memref<2x16x256xf32, #tpu.memory_space<vmem>>, %arg9: memref<2x64xf32, #tpu.memory_space<vmem>>, %arg10: memref<20x128xf32, #tpu.memory_space<vmem>>, %arg11: memref<18x128xf32, #tpu.memory_space<vmem>>) attributes {dimension_semantics = [#tpu.dimension_semantics<arbitrary>], iteration_bounds = array<i64: 1>, scalar_prefetch = 0 : i64, scratch_operands = 2 : i64, tpu.core_type = #tpu.core_type<tc>, window_params = [{pipeline_mode = #tpu.pipeline_mode<synchronous>, transform_indices = @transform_0, window_bounds = array<i64: 30, 512>}, {pipeline_mode = #tpu.pipeline_mode<synchronous>, transform_indices = @transform_1, window_bounds = array<i64: 2, 32>}, {pipeline_mode = #tpu.pipeline_mode<synchronous>, transform_indices = @transform_2, window_bounds = array<i64: 512, 128>}, {pipeline_mode = #tpu.pipeline_mode<synchronous>, transform_indices = @transform_3, window_bounds = array<i64: 16, 128, 128>}, {pipeline_mode = #tpu.pipeline_mode<synchronous>, transform_indices = @transform_4, window_bounds = array<i64: 128, 512>}, {pipeline_mode = #tpu.pipeline_mode<synchronous>, transform_indices = @transform_5, window_bounds = array<i64: 32, 768>}, {pipeline_mode = #tpu.pipeline_mode<synchronous>, transform_indices = @transform_6, window_bounds = array<i64: 6, 768>}, {pipeline_mode = #tpu.pipeline_mode<synchronous>, transform_indices = @transform_7, window_bounds = array<i64: 2, 16, 256>}, {pipeline_mode = #tpu.pipeline_mode<synchronous>, transform_indices = @transform_8, window_bounds = array<i64: 2, 64>}]} {
    %c0 = arith.constant 0 : index
    %c0_0 = arith.constant 0 : index
    %0 = vector.load %arg7[%c0, %c0_0] : memref<6x768xf32, #tpu.memory_space<vmem>>, vector<6x768xf32>
    %1 = vector.extract_strided_slice %0 {offsets = [0, 0], sizes = [1, 128], strides = [1, 1]} : vector<6x768xf32> to vector<1x128xf32>
    %2 = vector.extract_strided_slice %0 {offsets = [1, 0], sizes = [1, 128], strides = [1, 1]} : vector<6x768xf32> to vector<1x128xf32>
    %3 = vector.extract_strided_slice %0 {offsets = [2, 0], sizes = [1, 64], strides = [1, 1]} : vector<6x768xf32> to vector<1x64xf32>
    %4 = vector.extract_strided_slice %0 {offsets = [3, 0], sizes = [1, 768], strides = [1, 1]} : vector<6x768xf32> to vector<1x768xf32>
    %5 = vector.extract_strided_slice %0 {offsets = [4, 0], sizes = [1, 128], strides = [1, 1]} : vector<6x768xf32> to vector<1x128xf32>
    %6 = vector.extract_strided_slice %0 {offsets = [5, 0], sizes = [1, 256], strides = [1, 1]} : vector<6x768xf32> to vector<1x256xf32>
    %c0_1 = arith.constant 0 : index
    %c0_2 = arith.constant 0 : index
    %7 = vector.load %arg1[%c0_1, %c0_2] : memref<30x512xf32, #tpu.memory_space<vmem>>, vector<30x512xf32>
    %c0_3 = arith.constant 0 : index
    %c0_4 = arith.constant 0 : index
    %8 = vector.load %arg3[%c0_3, %c0_4] : memref<512x128xbf16, #tpu.memory_space<vmem>>, vector<512x128xbf16>
    %9 = arith.truncf %7 : vector<30x512xf32> to vector<30x512xbf16>
    %cst = arith.constant dense<0.000000e+00> : vector<30x128xf32>
    %10 = tpu.matmul %9, %8, %cst {dimension_numbers = #tpu.dot_dimension_numbers<[1], [0], [0], [1], [0, 0, 1, 1], [], []>} : vector<30x512xbf16>, vector<512x128xbf16>, vector<30x128xf32> -> vector<30x128xf32>
    %11 = vector.broadcast %1 : vector<1x128xf32> to vector<30x128xf32>
    %12 = arith.addf %10, %11 : vector<30x128xf32>
    %cst_5 = arith.constant 0.000000e+00 : f32
    %13 = vector.broadcast %cst_5 : f32 to vector<30x128xf32>
    %14 = arith.maximumf %12, %13 : vector<30x128xf32>
    %15 = vector.extract_strided_slice %14 {offsets = [0, 0], sizes = [16, 128], strides = [1, 1]} : vector<30x128xf32> to vector<16x128xf32>
    %16 = vector.extract_strided_slice %14 {offsets = [16, 0], sizes = [14, 128], strides = [1, 1]} : vector<30x128xf32> to vector<14x128xf32>
    %17 = vector.extract_strided_slice %15 {offsets = [0, 0], sizes = [12, 128], strides = [1, 1]} : vector<16x128xf32> to vector<12x128xf32>
    %c0_6 = arith.constant 0 : index
    %c0_7 = arith.constant 0 : index
    %c0_8 = arith.constant 0 : index
    %18 = vector.load %arg4[%c0_6, %c0_7, %c0_8] : memref<16x128x128xbf16, #tpu.memory_space<vmem>>, vector<1x128x128xbf16>
    %19 = vector.shape_cast %18 : vector<1x128x128xbf16> to vector<128x128xbf16>
    %20 = arith.truncf %17 : vector<12x128xf32> to vector<12x128xbf16>
    %cst_9 = arith.constant dense<0.000000e+00> : vector<12x128xf32>
    %21 = tpu.matmul %20, %19, %cst_9 {dimension_numbers = #tpu.dot_dimension_numbers<[1], [0], [0], [1], [0, 0, 1, 1], [], []>} : vector<12x128xbf16>, vector<128x128xbf16>, vector<12x128xf32> -> vector<12x128xf32>
    %22 = vector.extract_strided_slice %16 {offsets = [0, 0], sizes = [12, 128], strides = [1, 1]} : vector<14x128xf32> to vector<12x128xf32>
    %c1 = arith.constant 1 : index
    %c0_10 = arith.constant 0 : index
    %c0_11 = arith.constant 0 : index
    %23 = vector.load %arg4[%c1, %c0_10, %c0_11] : memref<16x128x128xbf16, #tpu.memory_space<vmem>>, vector<1x128x128xbf16>
    %24 = vector.shape_cast %23 : vector<1x128x128xbf16> to vector<128x128xbf16>
    %25 = arith.truncf %22 : vector<12x128xf32> to vector<12x128xbf16>
    %cst_12 = arith.constant dense<0.000000e+00> : vector<12x128xf32>
    %26 = tpu.matmul %25, %24, %cst_12 {dimension_numbers = #tpu.dot_dimension_numbers<[1], [0], [0], [1], [0, 0, 1, 1], [], []>} : vector<12x128xbf16>, vector<128x128xbf16>, vector<12x128xf32> -> vector<12x128xf32>
    %27 = arith.addf %21, %26 : vector<12x128xf32>
    %28 = vector.extract_strided_slice %15 {offsets = [2, 0], sizes = [12, 128], strides = [1, 1]} : vector<16x128xf32> to vector<12x128xf32>
    %c2 = arith.constant 2 : index
    %c0_13 = arith.constant 0 : index
    %c0_14 = arith.constant 0 : index
    %29 = vector.load %arg4[%c2, %c0_13, %c0_14] : memref<16x128x128xbf16, #tpu.memory_space<vmem>>, vector<1x128x128xbf16>
    %30 = vector.shape_cast %29 : vector<1x128x128xbf16> to vector<128x128xbf16>
    %31 = arith.truncf %28 : vector<12x128xf32> to vector<12x128xbf16>
    %cst_15 = arith.constant dense<0.000000e+00> : vector<12x128xf32>
    %32 = tpu.matmul %31, %30, %cst_15 {dimension_numbers = #tpu.dot_dimension_numbers<[1], [0], [0], [1], [0, 0, 1, 1], [], []>} : vector<12x128xbf16>, vector<128x128xbf16>, vector<12x128xf32> -> vector<12x128xf32>
    %33 = arith.addf %27, %32 : vector<12x128xf32>
    %34 = vector.extract_strided_slice %16 {offsets = [2, 0], sizes = [12, 128], strides = [1, 1]} : vector<14x128xf32> to vector<12x128xf32>
    %c3 = arith.constant 3 : index
    %c0_16 = arith.constant 0 : index
    %c0_17 = arith.constant 0 : index
    %35 = vector.load %arg4[%c3, %c0_16, %c0_17] : memref<16x128x128xbf16, #tpu.memory_space<vmem>>, vector<1x128x128xbf16>
    %36 = vector.shape_cast %35 : vector<1x128x128xbf16> to vector<128x128xbf16>
    %37 = arith.truncf %34 : vector<12x128xf32> to vector<12x128xbf16>
    %cst_18 = arith.constant dense<0.000000e+00> : vector<12x128xf32>
    %38 = tpu.matmul %37, %36, %cst_18 {dimension_numbers = #tpu.dot_dimension_numbers<[1], [0], [0], [1], [0, 0, 1, 1], [], []>} : vector<12x128xbf16>, vector<128x128xbf16>, vector<12x128xf32> -> vector<12x128xf32>
    %39 = arith.addf %33, %38 : vector<12x128xf32>
    %40 = vector.extract_strided_slice %15 {offsets = [4, 0], sizes = [12, 128], strides = [1, 1]} : vector<16x128xf32> to vector<12x128xf32>
    %c4 = arith.constant 4 : index
    %c0_19 = arith.constant 0 : index
    %c0_20 = arith.constant 0 : index
    %41 = vector.load %arg4[%c4, %c0_19, %c0_20] : memref<16x128x128xbf16, #tpu.memory_space<vmem>>, vector<1x128x128xbf16>
    %42 = vector.shape_cast %41 : vector<1x128x128xbf16> to vector<128x128xbf16>
    %43 = arith.truncf %40 : vector<12x128xf32> to vector<12x128xbf16>
    %cst_21 = arith.constant dense<0.000000e+00> : vector<12x128xf32>
    %44 = tpu.matmul %43, %42, %cst_21 {dimension_numbers = #tpu.dot_dimension_numbers<[1], [0], [0], [1], [0, 0, 1, 1], [], []>} : vector<12x128xbf16>, vector<128x128xbf16>, vector<12x128xf32> -> vector<12x128xf32>
    %45 = arith.addf %39, %44 : vector<12x128xf32>
    %46 = vector.broadcast %2 : vector<1x128xf32> to vector<12x128xf32>
    %47 = arith.addf %45, %46 : vector<12x128xf32>
    %cst_22 = arith.constant 0.000000e+00 : f32
    %48 = vector.broadcast %cst_22 : f32 to vector<12x128xf32>
    %49 = arith.maximumf %47, %48 : vector<12x128xf32>
    %50 = vector.extract_strided_slice %49 {offsets = [0, 0], sizes = [2, 128], strides = [1, 1]} : vector<12x128xf32> to vector<2x128xf32>
    %c10 = arith.constant 10 : index
    %c0_23 = arith.constant 0 : index
    %c0_24 = arith.constant 0 : index
    %51 = vector.load %arg4[%c10, %c0_23, %c0_24] : memref<16x128x128xbf16, #tpu.memory_space<vmem>>, vector<1x128x128xbf16>
    %52 = vector.shape_cast %51 : vector<1x128x128xbf16> to vector<128x128xbf16>
    %53 = arith.truncf %50 : vector<2x128xf32> to vector<2x128xbf16>
    %cst_25 = arith.constant dense<0.000000e+00> : vector<2x128xf32>
    %54 = tpu.matmul %53, %52, %cst_25 {dimension_numbers = #tpu.dot_dimension_numbers<[1], [0], [0], [1], [0, 0, 1, 1], [], []>} : vector<2x128xbf16>, vector<128x128xbf16>, vector<2x128xf32> -> vector<2x128xf32>
    %55 = vector.extract_strided_slice %49 {offsets = [2, 0], sizes = [2, 128], strides = [1, 1]} : vector<12x128xf32> to vector<2x128xf32>
    %c11 = arith.constant 11 : index
    %c0_26 = arith.constant 0 : index
    %c0_27 = arith.constant 0 : index
    %56 = vector.load %arg4[%c11, %c0_26, %c0_27] : memref<16x128x128xbf16, #tpu.memory_space<vmem>>, vector<1x128x128xbf16>
    %57 = vector.shape_cast %56 : vector<1x128x128xbf16> to vector<128x128xbf16>
    %58 = arith.truncf %55 : vector<2x128xf32> to vector<2x128xbf16>
    %cst_28 = arith.constant dense<0.000000e+00> : vector<2x128xf32>
    %59 = tpu.matmul %58, %57, %cst_28 {dimension_numbers = #tpu.dot_dimension_numbers<[1], [0], [0], [1], [0, 0, 1, 1], [], []>} : vector<2x128xbf16>, vector<128x128xbf16>, vector<2x128xf32> -> vector<2x128xf32>
    %60 = arith.addf %54, %59 : vector<2x128xf32>
    %61 = vector.extract_strided_slice %49 {offsets = [4, 0], sizes = [2, 128], strides = [1, 1]} : vector<12x128xf32> to vector<2x128xf32>
    %c12 = arith.constant 12 : index
    %c0_29 = arith.constant 0 : index
    %c0_30 = arith.constant 0 : index
    %62 = vector.load %arg4[%c12, %c0_29, %c0_30] : memref<16x128x128xbf16, #tpu.memory_space<vmem>>, vector<1x128x128xbf16>
    %63 = vector.shape_cast %62 : vector<1x128x128xbf16> to vector<128x128xbf16>
    %64 = arith.truncf %61 : vector<2x128xf32> to vector<2x128xbf16>
    %cst_31 = arith.constant dense<0.000000e+00> : vector<2x128xf32>
    %65 = tpu.matmul %64, %63, %cst_31 {dimension_numbers = #tpu.dot_dimension_numbers<[1], [0], [0], [1], [0, 0, 1, 1], [], []>} : vector<2x128xbf16>, vector<128x128xbf16>, vector<2x128xf32> -> vector<2x128xf32>
    %66 = arith.addf %60, %65 : vector<2x128xf32>
    %67 = vector.extract_strided_slice %49 {offsets = [6, 0], sizes = [2, 128], strides = [1, 1]} : vector<12x128xf32> to vector<2x128xf32>
    %c13 = arith.constant 13 : index
    %c0_32 = arith.constant 0 : index
    %c0_33 = arith.constant 0 : index
    %68 = vector.load %arg4[%c13, %c0_32, %c0_33] : memref<16x128x128xbf16, #tpu.memory_space<vmem>>, vector<1x128x128xbf16>
    %69 = vector.shape_cast %68 : vector<1x128x128xbf16> to vector<128x128xbf16>
    %70 = arith.truncf %67 : vector<2x128xf32> to vector<2x128xbf16>
    %cst_34 = arith.constant dense<0.000000e+00> : vector<2x128xf32>
    %71 = tpu.matmul %70, %69, %cst_34 {dimension_numbers = #tpu.dot_dimension_numbers<[1], [0], [0], [1], [0, 0, 1, 1], [], []>} : vector<2x128xbf16>, vector<128x128xbf16>, vector<2x128xf32> -> vector<2x128xf32>
    %72 = arith.addf %66, %71 : vector<2x128xf32>
    %73 = vector.extract_strided_slice %49 {offsets = [8, 0], sizes = [2, 128], strides = [1, 1]} : vector<12x128xf32> to vector<2x128xf32>
    %c14 = arith.constant 14 : index
    %c0_35 = arith.constant 0 : index
    %c0_36 = arith.constant 0 : index
    %74 = vector.load %arg4[%c14, %c0_35, %c0_36] : memref<16x128x128xbf16, #tpu.memory_space<vmem>>, vector<1x128x128xbf16>
    %75 = vector.shape_cast %74 : vector<1x128x128xbf16> to vector<128x128xbf16>
    %76 = arith.truncf %73 : vector<2x128xf32> to vector<2x128xbf16>
    %cst_37 = arith.constant dense<0.000000e+00> : vector<2x128xf32>
    %77 = tpu.matmul %76, %75, %cst_37 {dimension_numbers = #tpu.dot_dimension_numbers<[1], [0], [0], [1], [0, 0, 1, 1], [], []>} : vector<2x128xbf16>, vector<128x128xbf16>, vector<2x128xf32> -> vector<2x128xf32>
    %78 = arith.addf %72, %77 : vector<2x128xf32>
    %79 = vector.extract_strided_slice %49 {offsets = [10, 0], sizes = [2, 128], strides = [1, 1]} : vector<12x128xf32> to vector<2x128xf32>
    %c15 = arith.constant 15 : index
    %c0_38 = arith.constant 0 : index
    %c0_39 = arith.constant 0 : index
    %80 = vector.load %arg4[%c15, %c0_38, %c0_39] : memref<16x128x128xbf16, #tpu.memory_space<vmem>>, vector<1x128x128xbf16>
    %81 = vector.shape_cast %80 : vector<1x128x128xbf16> to vector<128x128xbf16>
    %82 = arith.truncf %79 : vector<2x128xf32> to vector<2x128xbf16>
    %cst_40 = arith.constant dense<0.000000e+00> : vector<2x128xf32>
    %83 = tpu.matmul %82, %81, %cst_40 {dimension_numbers = #tpu.dot_dimension_numbers<[1], [0], [0], [1], [0, 0, 1, 1], [], []>} : vector<2x128xbf16>, vector<128x128xbf16>, vector<2x128xf32> -> vector<2x128xf32>
    %84 = arith.addf %78, %83 : vector<2x128xf32>
    %85 = vector.extract_strided_slice %84 {offsets = [0, 0], sizes = [2, 64], strides = [1, 1]} : vector<2x128xf32> to vector<2x64xf32>
    %86 = vector.broadcast %3 : vector<1x64xf32> to vector<2x64xf32>
    %87 = arith.addf %85, %86 : vector<2x64xf32>
    %88 = vector.extract_strided_slice %87 {offsets = [0, 0], sizes = [2, 32], strides = [1, 1]} : vector<2x64xf32> to vector<2x32xf32>
    %89 = vector.extract_strided_slice %87 {offsets = [0, 32], sizes = [2, 32], strides = [1, 1]} : vector<2x64xf32> to vector<2x32xf32>
    %cst_41 = arith.constant 5.000000e-01 : f32
    %90 = vector.broadcast %cst_41 : f32 to vector<2x32xf32>
    %91 = arith.mulf %90, %89 : vector<2x32xf32>
    %92 = math.exp %91 : vector<2x32xf32>
    %c0_42 = arith.constant 0 : index
    %c0_43 = arith.constant 0 : index
    %93 = vector.load %arg2[%c0_42, %c0_43] : memref<2x32xf32, #tpu.memory_space<vmem>>, vector<2x32xf32>
    %94 = arith.mulf %92, %93 : vector<2x32xf32>
    %95 = arith.addf %88, %94 : vector<2x32xf32>
    %c0_44 = arith.constant 0 : index
    %c0_45 = arith.constant 0 : index
    %96 = vector.load %arg9[%c0_44, %c0_45] : memref<2x64xf32, #tpu.memory_space<vmem>>, vector<2x64xf32>
    tpu.vector_store %arg9[%c0_44, %c0_45], %87 {strides = array<i32>} : memref<2x64xf32, #tpu.memory_space<vmem>>, vector<2x64xf32>,
    %c0_46 = arith.constant 0 : index
    %c0_47 = arith.constant 0 : index
    %97 = vector.load %arg6[%c0_46, %c0_47] : memref<32x768xbf16, #tpu.memory_space<vmem>>, vector<32x768xbf16>
    %98 = arith.truncf %95 : vector<2x32xf32> to vector<2x32xbf16>
    %cst_48 = arith.constant dense<0.000000e+00> : vector<2x768xf32>
    %99 = tpu.matmul %98, %97, %cst_48 {dimension_numbers = #tpu.dot_dimension_numbers<[1], [0], [0], [1], [0, 0, 1, 1], [], []>} : vector<2x32xbf16>, vector<32x768xbf16>, vector<2x768xf32> -> vector<2x768xf32>
    %100 = vector.broadcast %4 : vector<1x768xf32> to vector<2x768xf32>
    %101 = arith.addf %99, %100 : vector<2x768xf32>
    %cst_49 = arith.constant 0.000000e+00 : f32
    %102 = vector.broadcast %cst_49 : f32 to vector<4x128xf32>
    %c0_50 = arith.constant 0 : index
    %c0_51 = arith.constant 0 : index
    %103 = vector.load %arg10[%c0_50, %c0_51] : memref<20x128xf32, #tpu.memory_space<vmem>>, vector<4x128xf32>
    tpu.vector_store %arg10[%c0_50, %c0_51], %102 {strides = array<i32>} : memref<20x128xf32, #tpu.memory_space<vmem>>, vector<4x128xf32>,
    %cst_52 = arith.constant 0.000000e+00 : f32
    %104 = vector.broadcast %cst_52 : f32 to vector<4x128xf32>
    %c16 = arith.constant 16 : index
    %c0_53 = arith.constant 0 : index
    %105 = vector.load %arg10[%c16, %c0_53] : memref<20x128xf32, #tpu.memory_space<vmem>>, vector<4x128xf32>
    tpu.vector_store %arg10[%c16, %c0_53], %104 {strides = array<i32>} : memref<20x128xf32, #tpu.memory_space<vmem>>, vector<4x128xf32>,
    %106 = vector.extract_strided_slice %101 {offsets = [0, 0], sizes = [2, 128], strides = [1, 1]} : vector<2x768xf32> to vector<2x128xf32>
    %c4_54 = arith.constant 4 : index
    %c0_55 = arith.constant 0 : index
    %107 = vector.load %arg10[%c4_54, %c0_55] : memref<20x128xf32, #tpu.memory_space<vmem>>, vector<2x128xf32>
    tpu.vector_store %arg10[%c4_54, %c0_55], %106 {strides = array<i32>} : memref<20x128xf32, #tpu.memory_space<vmem>>, vector<2x128xf32>,
    %108 = vector.extract_strided_slice %101 {offsets = [0, 128], sizes = [2, 128], strides = [1, 1]} : vector<2x768xf32> to vector<2x128xf32>
    %c6 = arith.constant 6 : index
    %c0_56 = arith.constant 0 : index
    %109 = vector.load %arg10[%c6, %c0_56] : memref<20x128xf32, #tpu.memory_space<vmem>>, vector<2x128xf32>
    tpu.vector_store %arg10[%c6, %c0_56], %108 {strides = array<i32>} : memref<20x128xf32, #tpu.memory_space<vmem>>, vector<2x128xf32>,
    %110 = vector.extract_strided_slice %101 {offsets = [0, 256], sizes = [2, 128], strides = [1, 1]} : vector<2x768xf32> to vector<2x128xf32>
    %c8 = arith.constant 8 : index
    %c0_57 = arith.constant 0 : index
    %111 = vector.load %arg10[%c8, %c0_57] : memref<20x128xf32, #tpu.memory_space<vmem>>, vector<2x128xf32>
    tpu.vector_store %arg10[%c8, %c0_57], %110 {strides = array<i32>} : memref<20x128xf32, #tpu.memory_space<vmem>>, vector<2x128xf32>,
    %112 = vector.extract_strided_slice %101 {offsets = [0, 384], sizes = [2, 128], strides = [1, 1]} : vector<2x768xf32> to vector<2x128xf32>
    %c10_58 = arith.constant 10 : index
    %c0_59 = arith.constant 0 : index
    %113 = vector.load %arg10[%c10_58, %c0_59] : memref<20x128xf32, #tpu.memory_space<vmem>>, vector<2x128xf32>
    tpu.vector_store %arg10[%c10_58, %c0_59], %112 {strides = array<i32>} : memref<20x128xf32, #tpu.memory_space<vmem>>, vector<2x128xf32>,
    %114 = vector.extract_strided_slice %101 {offsets = [0, 512], sizes = [2, 128], strides = [1, 1]} : vector<2x768xf32> to vector<2x128xf32>
    %c12_60 = arith.constant 12 : index
    %c0_61 = arith.constant 0 : index
    %115 = vector.load %arg10[%c12_60, %c0_61] : memref<20x128xf32, #tpu.memory_space<vmem>>, vector<2x128xf32>
    tpu.vector_store %arg10[%c12_60, %c0_61], %114 {strides = array<i32>} : memref<20x128xf32, #tpu.memory_space<vmem>>, vector<2x128xf32>,
    %116 = vector.extract_strided_slice %101 {offsets = [0, 640], sizes = [2, 128], strides = [1, 1]} : vector<2x768xf32> to vector<2x128xf32>
    %c14_62 = arith.constant 14 : index
    %c0_63 = arith.constant 0 : index
    %117 = vector.load %arg10[%c14_62, %c0_63] : memref<20x128xf32, #tpu.memory_space<vmem>>, vector<2x128xf32>
    tpu.vector_store %arg10[%c14_62, %c0_63], %116 {strides = array<i32>} : memref<20x128xf32, #tpu.memory_space<vmem>>, vector<2x128xf32>,
    %c0_64 = arith.constant 0 : index
    %c0_65 = arith.constant 0 : index
    %118 = vector.load %arg10[%c0_64, %c0_65] : memref<20x128xf32, #tpu.memory_space<vmem>>, vector<20x128xf32>
    %119 = vector.extract_strided_slice %118 {offsets = [4, 0], sizes = [16, 128], strides = [1, 1]} : vector<20x128xf32> to vector<16x128xf32>
    %c5 = arith.constant 5 : index
    %c0_66 = arith.constant 0 : index
    %c0_67 = arith.constant 0 : index
    %120 = vector.load %arg4[%c5, %c0_66, %c0_67] : memref<16x128x128xbf16, #tpu.memory_space<vmem>>, vector<1x128x128xbf16>
    %121 = vector.shape_cast %120 : vector<1x128x128xbf16> to vector<128x128xbf16>
    %122 = arith.truncf %119 : vector<16x128xf32> to vector<16x128xbf16>
    %cst_68 = arith.constant dense<0.000000e+00> : vector<16x128xf32>
    %123 = tpu.matmul %122, %121, %cst_68 {dimension_numbers = #tpu.dot_dimension_numbers<[1], [0], [0], [1], [0, 0, 1, 1], [], []>} : vector<16x128xbf16>, vector<128x128xbf16>, vector<16x128xf32> -> vector<16x128xf32>
    %124 = vector.extract_strided_slice %118 {offsets = [2, 0], sizes = [16, 128], strides = [1, 1]} : vector<20x128xf32> to vector<16x128xf32>
    %c7 = arith.constant 7 : index
    %c0_69 = arith.constant 0 : index
    %c0_70 = arith.constant 0 : index
    %125 = vector.load %arg4[%c7, %c0_69, %c0_70] : memref<16x128x128xbf16, #tpu.memory_space<vmem>>, vector<1x128x128xbf16>
    %126 = vector.shape_cast %125 : vector<1x128x128xbf16> to vector<128x128xbf16>
    %127 = arith.truncf %124 : vector<16x128xf32> to vector<16x128xbf16>
    %cst_71 = arith.constant dense<0.000000e+00> : vector<16x128xf32>
    %128 = tpu.matmul %127, %126, %cst_71 {dimension_numbers = #tpu.dot_dimension_numbers<[1], [0], [0], [1], [0, 0, 1, 1], [], []>} : vector<16x128xbf16>, vector<128x128xbf16>, vector<16x128xf32> -> vector<16x128xf32>
    %129 = arith.addf %123, %128 : vector<16x128xf32>
    %130 = vector.extract_strided_slice %118 {offsets = [0, 0], sizes = [16, 128], strides = [1, 1]} : vector<20x128xf32> to vector<16x128xf32>
    %c9 = arith.constant 9 : index
    %c0_72 = arith.constant 0 : index
    %c0_73 = arith.constant 0 : index
    %131 = vector.load %arg4[%c9, %c0_72, %c0_73] : memref<16x128x128xbf16, #tpu.memory_space<vmem>>, vector<1x128x128xbf16>
    %132 = vector.shape_cast %131 : vector<1x128x128xbf16> to vector<128x128xbf16>
    %133 = arith.truncf %130 : vector<16x128xf32> to vector<16x128xbf16>
    %cst_74 = arith.constant dense<0.000000e+00> : vector<16x128xf32>
    %134 = tpu.matmul %133, %132, %cst_74 {dimension_numbers = #tpu.dot_dimension_numbers<[1], [0], [0], [1], [0, 0, 1, 1], [], []>} : vector<16x128xbf16>, vector<128x128xbf16>, vector<16x128xf32> -> vector<16x128xf32>
    %135 = arith.addf %129, %134 : vector<16x128xf32>
    %136 = vector.broadcast %5 : vector<1x128xf32> to vector<16x128xf32>
    %137 = arith.addf %135, %136 : vector<16x128xf32>
    %cst_75 = arith.constant 0.000000e+00 : f32
    %138 = vector.broadcast %cst_75 : f32 to vector<16x128xf32>
    %139 = arith.maximumf %137, %138 : vector<16x128xf32>
    %140 = vector.extract_strided_slice %118 {offsets = [4, 0], sizes = [14, 128], strides = [1, 1]} : vector<20x128xf32> to vector<14x128xf32>
    %c6_76 = arith.constant 6 : index
    %c0_77 = arith.constant 0 : index
    %c0_78 = arith.constant 0 : index
    %141 = vector.load %arg4[%c6_76, %c0_77, %c0_78] : memref<16x128x128xbf16, #tpu.memory_space<vmem>>, vector<1x128x128xbf16>
    %142 = vector.shape_cast %141 : vector<1x128x128xbf16> to vector<128x128xbf16>
    %143 = arith.truncf %140 : vector<14x128xf32> to vector<14x128xbf16>
    %cst_79 = arith.constant dense<0.000000e+00> : vector<14x128xf32>
    %144 = tpu.matmul %143, %142, %cst_79 {dimension_numbers = #tpu.dot_dimension_numbers<[1], [0], [0], [1], [0, 0, 1, 1], [], []>} : vector<14x128xbf16>, vector<128x128xbf16>, vector<14x128xf32> -> vector<14x128xf32>
    %145 = vector.extract_strided_slice %118 {offsets = [2, 0], sizes = [14, 128], strides = [1, 1]} : vector<20x128xf32> to vector<14x128xf32>
    %c8_80 = arith.constant 8 : index
    %c0_81 = arith.constant 0 : index
    %c0_82 = arith.constant 0 : index
    %146 = vector.load %arg4[%c8_80, %c0_81, %c0_82] : memref<16x128x128xbf16, #tpu.memory_space<vmem>>, vector<1x128x128xbf16>
    %147 = vector.shape_cast %146 : vector<1x128x128xbf16> to vector<128x128xbf16>
    %148 = arith.truncf %145 : vector<14x128xf32> to vector<14x128xbf16>
    %cst_83 = arith.constant dense<0.000000e+00> : vector<14x128xf32>
    %149 = tpu.matmul %148, %147, %cst_83 {dimension_numbers = #tpu.dot_dimension_numbers<[1], [0], [0], [1], [0, 0, 1, 1], [], []>} : vector<14x128xbf16>, vector<128x128xbf16>, vector<14x128xf32> -> vector<14x128xf32>
    %150 = arith.addf %144, %149 : vector<14x128xf32>
    %151 = vector.broadcast %5 : vector<1x128xf32> to vector<14x128xf32>
    %152 = arith.addf %150, %151 : vector<14x128xf32>
    %cst_84 = arith.constant 0.000000e+00 : f32
    %153 = vector.broadcast %cst_84 : f32 to vector<14x128xf32>
    %154 = arith.maximumf %152, %153 : vector<14x128xf32>
    %cst_85 = arith.constant 0.000000e+00 : f32
    %155 = vector.broadcast %cst_85 : f32 to vector<2x128xf32>
    %c0_86 = arith.constant 0 : index
    %c0_87 = arith.constant 0 : index
    %156 = vector.load %arg11[%c0_86, %c0_87] : memref<18x128xf32, #tpu.memory_space<vmem>>, vector<2x128xf32>
    tpu.vector_store %arg11[%c0_86, %c0_87], %155 {strides = array<i32>} : memref<18x128xf32, #tpu.memory_space<vmem>>, vector<2x128xf32>,
    %cst_88 = arith.constant 0.000000e+00 : f32
    %157 = vector.broadcast %cst_88 : f32 to vector<2x128xf32>
    %c16_89 = arith.constant 16 : index
    %c0_90 = arith.constant 0 : index
    %158 = vector.load %arg11[%c16_89, %c0_90] : memref<18x128xf32, #tpu.memory_space<vmem>>, vector<2x128xf32>
    tpu.vector_store %arg11[%c16_89, %c0_90], %157 {strides = array<i32>} : memref<18x128xf32, #tpu.memory_space<vmem>>, vector<2x128xf32>,
    %c2_91 = arith.constant 2 : index
    %c0_92 = arith.constant 0 : index
    %159 = vector.load %arg11[%c2_91, %c0_92] : memref<18x128xf32, #tpu.memory_space<vmem>>, vector<14x128xf32>
    tpu.vector_store %arg11[%c2_91, %c0_92], %154 {strides = array<i32>} : memref<18x128xf32, #tpu.memory_space<vmem>>, vector<14x128xf32>,
    %c0_93 = arith.constant 0 : index
    %c0_94 = arith.constant 0 : index
    %160 = vector.load %arg11[%c0_93, %c0_94] : memref<18x128xf32, #tpu.memory_space<vmem>>, vector<18x128xf32>
    %161 = vector.extract_strided_slice %160 {offsets = [0, 0], sizes = [16, 128], strides = [1, 1]} : vector<18x128xf32> to vector<16x128xf32>
    %162 = vector.extract_strided_slice %160 {offsets = [2, 0], sizes = [16, 128], strides = [1, 1]} : vector<18x128xf32> to vector<16x128xf32>
    %c0_95 = arith.constant 0 : index
    %c0_96 = arith.constant 0 : index
    %163 = vector.load %arg5[%c0_95, %c0_96] : memref<128x512xbf16, #tpu.memory_space<vmem>>, vector<128x512xbf16>
    %164 = arith.truncf %139 : vector<16x128xf32> to vector<16x128xbf16>
    %cst_97 = arith.constant dense<0.000000e+00> : vector<16x512xf32>
    %165 = tpu.matmul %164, %163, %cst_97 {dimension_numbers = #tpu.dot_dimension_numbers<[1], [0], [0], [1], [0, 0, 1, 1], [], []>} : vector<16x128xbf16>, vector<128x512xbf16>, vector<16x512xf32> -> vector<16x512xf32>
    %166 = vector.extract_strided_slice %163 {offsets = [0, 256], sizes = [128, 256], strides = [1, 1]} : vector<128x512xbf16> to vector<128x256xbf16>
    %167 = arith.truncf %161 : vector<16x128xf32> to vector<16x128xbf16>
    %cst_98 = arith.constant dense<0.000000e+00> : vector<16x256xf32>
    %168 = tpu.matmul %167, %166, %cst_98 {dimension_numbers = #tpu.dot_dimension_numbers<[1], [0], [0], [1], [0, 0, 1, 1], [], []>} : vector<16x128xbf16>, vector<128x256xbf16>, vector<16x256xf32> -> vector<16x256xf32>
    %169 = vector.extract_strided_slice %163 {offsets = [0, 0], sizes = [128, 256], strides = [1, 1]} : vector<128x512xbf16> to vector<128x256xbf16>
    %170 = arith.truncf %162 : vector<16x128xf32> to vector<16x128xbf16>
    %cst_99 = arith.constant dense<0.000000e+00> : vector<16x256xf32>
    %171 = tpu.matmul %170, %169, %cst_99 {dimension_numbers = #tpu.dot_dimension_numbers<[1], [0], [0], [1], [0, 0, 1, 1], [], []>} : vector<16x128xbf16>, vector<128x256xbf16>, vector<16x256xf32> -> vector<16x256xf32>
    %172 = vector.extract_strided_slice %165 {offsets = [0, 0], sizes = [16, 256], strides = [1, 1]} : vector<16x512xf32> to vector<16x256xf32>
    %173 = arith.addf %172, %168 : vector<16x256xf32>
    %174 = vector.broadcast %6 : vector<1x256xf32> to vector<16x256xf32>
    %175 = arith.addf %173, %174 : vector<16x256xf32>
    %176 = math.tanh %175 : vector<16x256xf32>
    %c0_100 = arith.constant 0 : index
    %c0_101 = arith.constant 0 : index
    %c0_102 = arith.constant 0 : index
    %177 = vector.load %arg8[%c0_100, %c0_101, %c0_102] : memref<2x16x256xf32, #tpu.memory_space<vmem>>, vector<1x16x256xf32>
    %178 = vector.shape_cast %177 : vector<1x16x256xf32> to vector<16x256xf32>
    %179 = vector.shape_cast %176 : vector<16x256xf32> to vector<1x16x256xf32>
    tpu.vector_store %arg8[%c0_100, %c0_101, %c0_102], %179 {strides = array<i32>} : memref<2x16x256xf32, #tpu.memory_space<vmem>>, vector<1x16x256xf32>,
    %180 = vector.extract_strided_slice %165 {offsets = [0, 256], sizes = [16, 256], strides = [1, 1]} : vector<16x512xf32> to vector<16x256xf32>
    %181 = arith.addf %180, %171 : vector<16x256xf32>
    %182 = vector.broadcast %6 : vector<1x256xf32> to vector<16x256xf32>
    %183 = arith.addf %181, %182 : vector<16x256xf32>
    %184 = math.tanh %183 : vector<16x256xf32>
    %c1_103 = arith.constant 1 : index
    %c0_104 = arith.constant 0 : index
    %c0_105 = arith.constant 0 : index
    %185 = vector.load %arg8[%c1_103, %c0_104, %c0_105] : memref<2x16x256xf32, #tpu.memory_space<vmem>>, vector<1x16x256xf32>
    %186 = vector.shape_cast %185 : vector<1x16x256xf32> to vector<16x256xf32>
    %187 = vector.shape_cast %184 : vector<16x256xf32> to vector<1x16x256xf32>
    tpu.vector_store %arg8[%c1_103, %c0_104, %c0_105], %187 {strides = array<i32>} : memref<2x16x256xf32, #tpu.memory_space<vmem>>, vector<1x16x256xf32>,
    return
  }
  func.func @transform_0(%arg0: i32) -> (i32, i32) {
    %c0_i32 = arith.constant 0 : i32
    %c0_i32_0 = arith.constant 0 : i32
    %c0_i32_1 = arith.constant 0 : i32
    return %c0_i32, %c0_i32_0 : i32, i32
  }
  func.func @transform_1(%arg0: i32) -> (i32, i32) {
    %c0_i32 = arith.constant 0 : i32
    %c0_i32_0 = arith.constant 0 : i32
    %c0_i32_1 = arith.constant 0 : i32
    return %c0_i32, %c0_i32_0 : i32, i32
  }
  func.func @transform_2(%arg0: i32) -> (i32, i32) {
    %c0_i32 = arith.constant 0 : i32
    %c0_i32_0 = arith.constant 0 : i32
    %c0_i32_1 = arith.constant 0 : i32
    return %c0_i32, %c0_i32_0 : i32, i32
  }
  func.func @transform_3(%arg0: i32) -> (i32, i32, i32) {
    %c0_i32 = arith.constant 0 : i32
    %c0_i32_0 = arith.constant 0 : i32
    %c0_i32_1 = arith.constant 0 : i32
    %c0_i32_2 = arith.constant 0 : i32
    return %c0_i32, %c0_i32_0, %c0_i32_1 : i32, i32, i32
  }
  func.func @transform_4(%arg0: i32) -> (i32, i32) {
    %c0_i32 = arith.constant 0 : i32
    %c0_i32_0 = arith.constant 0 : i32
    %c0_i32_1 = arith.constant 0 : i32
    return %c0_i32, %c0_i32_0 : i32, i32
  }
  func.func @transform_5(%arg0: i32) -> (i32, i32) {
    %c0_i32 = arith.constant 0 : i32
    %c0_i32_0 = arith.constant 0 : i32
    %c0_i32_1 = arith.constant 0 : i32
    return %c0_i32, %c0_i32_0 : i32, i32
  }
  func.func @transform_6(%arg0: i32) -> (i32, i32) {
    %c0_i32 = arith.constant 0 : i32
    %c0_i32_0 = arith.constant 0 : i32
    %c0_i32_1 = arith.constant 0 : i32
    return %c0_i32, %c0_i32_0 : i32, i32
  }
  func.func @transform_7(%arg0: i32) -> (i32, i32, i32) {
    %c0_i32 = arith.constant 0 : i32
    %c0_i32_0 = arith.constant 0 : i32
    %c0_i32_1 = arith.constant 0 : i32
    %c0_i32_2 = arith.constant 0 : i32
    return %c0_i32, %c0_i32_0, %c0_i32_1 : i32, i32, i32
  }
  func.func @transform_8(%arg0: i32) -> (i32, i32) {
    %c0_i32 = arith.constant 0 : i32
    %c0_i32_0 = arith.constant 0 : i32
    %c0_i32_1 = arith.constant 0 : i32
    return %c0_i32, %c0_i32_0 : i32, i32
  }
}

</mosaic_0001>

<bundles_post_ra>
// kernel: image_vae_forward.1
= control target key start
LH: loop header
LB: loop body
LE: loop exit
PB: predicated region body
PF: predicated region fallthrough
CT: control target
= control target key end

     0   :  { %v4085_v1 = vmov 0.0   ;;  %vm4086_vm0 = vmmov 0   ;;  %s4087_s30 = smov 32   ;;  %vm1639_vm1 = vcmask 517120   ;;  %vm1738_vm2 = vcmask 261120   ;;  %s5187_s2 = inlined_call_operand.vmem [shape: bf16[512,128], index: 2, kind: input, shape index: {}]   ;;  %s5188_s0 = inlined_call_operand.vmem [shape: f32[30,512], index: 0, kind: input, shape index: {}]   ;;  %s5189_s3 = inlined_call_operand.vmem [shape: bf16[16,128,128], index: 3, kind: input, shape index: {}]   ;;  %s5190_s6 = inlined_call_operand.vmem [shape: f32[6,768], index: 6, kind: input, shape index: {}]   ;;  %s5191_s1 = inlined_call_operand.vmem [shape: f32[2,32], index: 1, kind: input, shape index: {}]   ;;  %s5192_s5 = inlined_call_operand.vmem [shape: bf16[32,768], index: 5, kind: input, shape index: {}]   ;;  %s5193_s8 = inlined_call_operand.vmem [shape: f32[2,64], index: 8, kind: output, shape index: {1}]   ;;  %s5194_s4 = inlined_call_operand.vmem [shape: bf16[128,512], index: 4, kind: input, shape index: {}]   ;;  %s5195_s7 = inlined_call_operand.vmem [shape: f32[2,16,256], index: 7, kind: output, shape index: {0}]  }
   0x1   :  { %v3840_v0 = vld [vmem:[%s5187_s2 + $0x78] sm:$0xff]   ;;  %1865 = vst [vmem:[#allocation2] sm:$0xf] %v4085_v1  ;;  %1866 = vst [vmem:[#allocation2 + $0x10] sm:$0xf] %v4085_v1  ;;  %v3844_v5 = vld [vmem:[%s5187_s2 + $0x70] sm:$0xff]  }
   0x2   :  { %2435 = vst [vmem:[#allocation3] sm:$0x3] %v4085_v1  ;;  %2436 = vst [vmem:[#allocation3 + $0x10] sm:$0x3] %v4085_v1  ;;  %v3841_v2 = vld [vmem:[%s5187_s2 + $0xf8] sm:$0xff]   ;;  %3315 = vmatprep.subr.bf16.mxu0 %v3840_v0  ;;  %v3845_v6 = vld [vmem:[%s5187_s2 + $0xf0] sm:$0xff]  }
   0x3   :  { %v3842_v3 = vld [vmem:[%s5187_s2 + $0x38] sm:$0xff]   ;;  %3343 = vmatprep.subr.bf16.mxu1 %v3841_v2  ;;  %v3846_v7 = vld [vmem:[%s5187_s2 + $0x30] sm:$0xff]   ;;  %v3848_v9 = vld [vmem:[%s5187_s2 + $0x68] sm:$0xff]   ;;  %vm1914_vm3 = vcmask 1046528   ;;  %vm2008_vm4 = vcmask 1045504  }
   0x4   :  { %v3843_v4 = vld [vmem:[%s5187_s2 + $0xb8] sm:$0xff]   ;;  %3316 = vmatpush3.bf16.msra.mxu0 %v3842_v3  ;;  %v3847_v8 = vld [vmem:[%s5187_s2 + $0xb0] sm:$0xff]   ;;  %v3849_v10 = vld [vmem:[%s5187_s2 + $0xe8] sm:$0xff]  }
   0x5   :  { %3344 = vmatpush3.bf16.msra.mxu1 %v3843_v4  ;;  %3317 = vmatprep.subr.bf16.mxu0 %v3844_v5  ;;  %v3850_v11 = vld [vmem:[%s5187_s2 + $0x28] sm:$0xff]   ;;  %v3852_v13 = vld [vmem:[%s5187_s2 + $0x60] sm:$0xff]   ;;  %v3856_v17 = vld [vmem:[%s5187_s2 + $0x58] sm:$0xff]  }
   0x6   :  { %3345 = vmatprep.subr.bf16.mxu1 %v3845_v6  ;;  %v3851_v12 = vld [vmem:[%s5187_s2 + $0xa8] sm:$0xff]   ;;  %v3853_v14 = vld [vmem:[%s5187_s2 + $0xe0] sm:$0xff]   ;;  %v3857_v18 = vld [vmem:[%s5187_s2 + $0xd8] sm:$0xff]  }
   0x7   :  { %v3854_v15 = vld [vmem:[%s5187_s2 + $0x20] sm:$0xff]   ;;  %v3858_v19 = vld [vmem:[%s5187_s2 + $0x18] sm:$0xff]   ;;  %v3860_v21 = vld [vmem:[%s5187_s2 + $0x50] sm:$0xff]  }
   0x8   :  { %3318 = vmatpush3.bf16.msra.mxu0 %v3846_v7  ;;  %v3855_v16 = vld [vmem:[%s5187_s2 + $0xa0] sm:$0xff]   ;;  %v3859_v20 = vld [vmem:[%s5187_s2 + $0x98] sm:$0xff]   ;;  %v3861_v22 = vld [vmem:[%s5187_s2 + $0xd0] sm:$0xff]  }
   0x9   :  { %3346 = vmatpush3.bf16.msra.mxu1 %v3847_v8  ;;  %3319 = vmatprep.subr.bf16.mxu0 %v3848_v9  ;;  %v3862_v23 = vld [vmem:[%s5187_s2 + $0x10] sm:$0xff]   ;;  %v3864_v25 = vld [vmem:[%s5187_s2 + $0x48] sm:$0xff]   ;;  %v3868_v29 = vld [vmem:[%s5187_s2 + $0x40] sm:$0xff]  }
   0xa   :  { %3347 = vmatprep.subr.bf16.mxu1 %v3849_v10  ;;  %v3863_v24 = vld [vmem:[%s5187_s2 + $0x90] sm:$0xff]   ;;  %v3865_v26 = vld [vmem:[%s5187_s2 + $0xc8] sm:$0xff]   ;;  %v3869_v30 = vld [vmem:[%s5187_s2 + $0xc0] sm:$0xff]   ;;  %v123_v10 = vlaneseq }
   0xb   :  { %v3866_v27 = vld [vmem:[%s5187_s2 + $0x8] sm:$0xff]   ;;  %v3870_v31 = vld [vmem:[%s5187_s2] sm:$0xff]   ;;  %v38_v35 = vld [vmem:[%s5188_s0 + $0x18] sm:$0xff] }
   0xc   :  { %3320 = vmatpush3.bf16.msra.mxu0 %v3850_v11  ;;  %v3867_v28 = vld [vmem:[%s5187_s2 + $0x88] sm:$0xff]   ;;  %v3871_v32 = vld [vmem:[%s5187_s2 + $0x80] sm:$0xff]   ;;  %v42_v37 = vld [vmem:[%s5188_s0 + $0x38] sm:$0xff]  ;;  %v4353_v11 = vshrl.u32 %v123_v10, 7 }
   0xd   :  { %3348 = vmatpush3.bf16.msra.mxu1 %v3851_v12  ;;  %3321 = vmatprep.subr.bf16.mxu0 %v3852_v13  ;;  %v36_v33 = vld [vmem:[%s5188_s0 + $0x8] sm:$0xff]  ;;  %v35_v38 = vld [vmem:[%s5188_s0] sm:$0xff]  ;;  %v118_v40 = vpack.c.bf16 %v42_v37, %v38_v35  ;;  %v37_v42 = vld [vmem:[%s5188_s0 + $0x10] sm:$0xff] }
   0xe   :  { %3349 = vmatprep.subr.bf16.mxu1 %v3853_v14  ;;  %v40_v34 = vld [vmem:[%s5188_s0 + $0x28] sm:$0xff]  ;;  %v39_v39 = vld [vmem:[%s5188_s0 + $0x20] sm:$0xff]  ;;  %v41_v43 = vld [vmem:[%s5188_s0 + $0x30] sm:$0xff]  ;;  %v125_v12 = vsub.s32 0, %v4353_v11 }
   0xf   :  { %v116_v36 = vpack.c.bf16 %v40_v34, %v36_v33  ;;  %v115_v41 = vpack.c.bf16 %v39_v39, %v35_v38  ;;  %v44_v44 = vld [vmem:[%s5188_s0 + $0x48] sm:$0xff]  ;;  %v117_v45 = vpack.c.bf16 %v41_v43, %v37_v42  ;;  %v46_v47 = vld [vmem:[%s5188_s0 + $0x58] sm:$0xff]  ;;  %400 = vmatprep.mubr.bf16.mxu1 %v118_v40  ;;  %v43_v51 = vld [vmem:[%s5188_s0 + $0x40] sm:$0xff] }
  0x10   :  { %3322 = vmatpush3.bf16.msra.mxu0 %v3854_v15  ;;  %v48_v46 = vld [vmem:[%s5188_s0 + $0x68] sm:$0x3f]  ;;  %v50_v48 = vld [vmem:[%s5188_s0 + $0x78] sm:$0x3f]  ;;  %v47_v52 = vld [vmem:[%s5188_s0 + $0x60] sm:$0x3f] }
  0x11   :  { %3350 = vmatpush3.bf16.msra.mxu1 %v3855_v16  ;;  %3323 = vmatprep.subr.bf16.mxu0 %v3856_v17  ;;  %v120_v49 = vpack.c.bf16 %v48_v46, %v44_v44  ;;  %v122_v50 = vpack.c.bf16 %v50_v48, %v46_v47  ;;  %v45_v53 = vld [vmem:[%s5188_s0 + $0x50] sm:$0xff]  ;;  %v3872_v55 = vld [vmem:[%s5189_s3 + $0x38] sm:$0xff]   ;;  %v119_v57 = vpack.c.bf16 %v47_v52, %v43_v51  ;;  %v3875_v61 = vld [vmem:[%s5189_s3 + $0x28] sm:$0xff]  }
  0x12   :  { %3351 = vmatprep.subr.bf16.mxu1 %v3857_v18  ;;  %351 = vmatprep.mubr.bf16.mxu0 %v116_v36  ;;  %v49_v54 = vld [vmem:[%s5188_s0 + $0x70] sm:$0x3f]  ;;  %v3874_v58 = vld [vmem:[%s5189_s3 + $0x78] sm:$0xff]   ;;  %v3877_v62 = vld [vmem:[%s5189_s3 + $0x20] sm:$0xff]  }
  0x13   :  { %v3873_v56 = vld [vmem:[%s5189_s3 + $0x30] sm:$0xff]   ;;  %v121_v59 = vpack.c.bf16 %v49_v54, %v45_v53  ;;  %v3878_v63 = vld [vmem:[%s5189_s3 + $0x68] sm:$0xff]   ;;  %v3879_v0 = vld [vmem:[%s5189_s3 + $0x18] sm:$0xff]  }
  0x14   :  { %3324 = vmatpush3.bf16.msra.mxu0 %v3858_v19  ;;  %v3876_v60 = vld [vmem:[%s5189_s3 + $0x70] sm:$0xff]   ;;  %v3880_v2 = vld [vmem:[%s5189_s3 + $0x60] sm:$0xff]   ;;  %v3882_v4 = vld [vmem:[%s5189_s3 + $0x58] sm:$0xff]  }
  0x15   :  { %3352 = vmatpush3.bf16.msra.mxu1 %v3859_v20  ;;  %3325 = vmatprep.subr.bf16.mxu0 %v3860_v21  ;;  %v3881_v3 = vld [vmem:[%s5189_s3 + $0x10] sm:$0xff]   ;;  %v3883_v5 = vld [vmem:[%s5189_s3 + $0x8] sm:$0xff]   ;;  %v3885_v7 = vld [vmem:[%s5189_s3] sm:$0xff]  }
  0x16   :  { %3353 = vmatprep.subr.bf16.mxu1 %v3861_v22  ;;  %v3884_v6 = vld [vmem:[%s5189_s3 + $0x50] sm:$0xff]   ;;  %v3886_v8 = vld [vmem:[%s5189_s3 + $0x48] sm:$0xff]   ;;  %v3888_v9 = vld [vmem:[%s5189_s3 + $0x40] sm:$0xff]  }
  0x17   :  { %v4359_v13 = vld [vmem:[%s5190_s6] sm:$0x3f]  ;;  %v3887_v42 = vld [vmem:[%s5189_s3 + $0xf8] sm:$0xff]   ;;  %v3906_v10 = vld [vmem:[%s5189_s3 + $0x128] sm:$0xff]  }
  0x18   :  { %3326 = vmatpush3.bf16.msra.mxu0 %v3862_v23  ;;  %v126_v16 = vrot.slane %v4359_v13, %v125_v12  ;;  %v3890_v54 = vld [vmem:[%s5189_s3 + $0xb8] sm:$0xff]   ;;  %v3907_v12 = vld [vmem:[%s5189_s3 + $0x120] sm:$0xff]  }
  0x19   :  { %3354 = vmatpush3.bf16.msra.mxu1 %v3863_v24  ;;  %3327 = vmatprep.subr.bf16.mxu0 %v3864_v25 }
  0x1a   :  { %3355 = vmatprep.subr.bf16.mxu1 %v3865_v26 }
  0x1c   :  { %3328 = vmatpush3.bf16.msra.mxu0 %v3866_v27 }
  0x1d   :  { %3356 = vmatpush3.bf16.msra.mxu1 %v3867_v28  ;;  %3329 = vmatprep.subr.bf16.mxu0 %v3868_v29 }
  0x1e   :  { %3357 = vmatprep.subr.bf16.mxu1 %v3869_v30 }
  0x20   :  { %3330 = vmatpush3.bf16.msra.mxu0 %v3870_v31 }
  0x21   :  { %3358 = vmatpush3.bf16.msra.mxu1 %v3871_v32  ;;  %3515 = vmatprep.subr.bf16.mxu0 %v4085_v1 }
  0x22   :  { %3535 = vmatprep.subr.bf16.mxu1 %v4085_v1 }
  0x23   :  { %352 = vmatmul.mubr.bf16.vlgmr.msra.gmra.mxu0 %v115_v41 }
  0x24   :  { %401 = vmatmul.mubr.bf16.vlgmr.msra.gmra.mxu1 %v117_v45  ;;  %359 = vmatprep.mubr.bf16.mxu0 %v120_v49 }
  0x25   :  { %408 = vmatprep.mubr.bf16.mxu1 %v122_v50  ;;  %3536 = vmatpush3.bf16.msra.mxu1 %v3872_v55  ;;  %v3889_v50 = vld [vmem:[%s5189_s3 + $0xf0] sm:$0xff]   ;;  %v3891_v55 = vld [vmem:[%s5189_s3 + $0xe8] sm:$0xff]  }
  0x26   :  { %3537 = vmatprep.subr.bf16.mxu1 %v4085_v1  ;;  %3516 = vmatpush3.bf16.msra.mxu0 %v3874_v58  ;;  %v3893_v58 = vld [vmem:[%s5189_s3 + $0xe0] sm:$0xff]  }
  0x27   :  { %3517 = vmatprep.subr.bf16.mxu0 %v4085_v1 }
  0x29   :  { %3538 = vmatpush3.bf16.msra.mxu1 %v3873_v56 }
  0x2a   :  { %3539 = vmatprep.subr.bf16.mxu1 %v4085_v1  ;;  %3518 = vmatpush3.bf16.msra.mxu0 %v3876_v60  ;;  %v3895_v60 = vld [vmem:[%s5189_s3 + $0xd8] sm:$0xff]  }
  0x2b   :  { %360 = vmatmul.mubr.bf16.gmra.mxu0 %v119_v57  ;;  %3519 = vmatprep.subr.bf16.mxu0 %v4085_v1  ;;  %v3892_v57 = vld [vmem:[%s5189_s3 + $0xb0] sm:$0xff]  }
  0x2c   :  { %409 = vmatmul.mubr.bf16.gmra.mxu1 %v121_v59  ;;  %3531 = vmatprep.mubr.msk.bf16.mxu0 %vm4086_vm0, %v4085_v1  ;;  %v3894_v59 = vld [vmem:[%s5189_s3 + $0xa8] sm:$0xff]  }
  0x2d   :  { %3540 = vmatpush3.bf16.msra.mxu1 %v3875_v61  ;;  %3551 = vmatprep.mubr.msk.bf16.mxu1 %vm4086_vm0, %v4085_v1  ;;  %v3896_v61 = vld [vmem:[%s5189_s3 + $0xa0] sm:$0xff]  }
  0x2e   :  { %3541 = vmatprep.subr.bf16.mxu1 %v4085_v1  ;;  %3520 = vmatpush3.bf16.msra.mxu0 %v3878_v63  ;;  %v3898_v63 = vld [vmem:[%s5189_s3 + $0x98] sm:$0xff]  }
  0x2f   :  { %3521 = vmatprep.subr.bf16.mxu0 %v4085_v1 }
  0x31   :  { %3542 = vmatpush3.bf16.msra.mxu1 %v3877_v62  ;;  %v3897_v62 = vld [vmem:[%s5189_s3 + $0xd0] sm:$0xff]  }
  0x32   :  { %3543 = vmatprep.subr.bf16.mxu1 %v4085_v1  ;;  %3522 = vmatpush3.bf16.msra.mxu0 %v3880_v2  ;;  %v3900_v2 = vld [vmem:[%s5189_s3 + $0x90] sm:$0xff]  }
  0x33   :  { %3523 = vmatprep.subr.bf16.mxu0 %v4085_v1 }
  0x35   :  { %3544 = vmatpush3.bf16.msra.mxu1 %v3879_v0  ;;  %v3899_v0 = vld [vmem:[%s5189_s3 + $0xc8] sm:$0xff]  }
  0x36   :  { %3545 = vmatprep.subr.bf16.mxu1 %v4085_v1  ;;  %3524 = vmatpush3.bf16.msra.mxu0 %v3882_v4  ;;  %v3902_v4 = vld [vmem:[%s5189_s3 + $0x88] sm:$0xff]  }
  0x37   :  { %3525 = vmatprep.subr.bf16.mxu0 %v4085_v1 }
  0x39   :  { %3546 = vmatpush3.bf16.msra.mxu1 %v3881_v3  ;;  %v3901_v3 = vld [vmem:[%s5189_s3 + $0xc0] sm:$0xff]  }
  0x3a   :  { %3547 = vmatprep.subr.bf16.mxu1 %v4085_v1  ;;  %3526 = vmatpush3.bf16.msra.mxu0 %v3884_v6  ;;  %v3903_v6 = vld [vmem:[%s5189_s3 + $0x80] sm:$0xff]  }
  0x3b   :  { %3527 = vmatprep.subr.bf16.mxu0 %v4085_v1 }
  0x3d   :  { %3548 = vmatpush3.bf16.msra.mxu1 %v3883_v5 }
  0x3e   :  { %3549 = vmatprep.subr.bf16.mxu1 %v4085_v1  ;;  %3528 = vmatpush3.bf16.msra.mxu0 %v3886_v8 }
  0x3f   :  { %3529 = vmatprep.subr.bf16.mxu0 %v4085_v1 }
  0x41   :  { %3550 = vmatpush3.bf16.msra.mxu1 %v3885_v7  ;;  %v3904_v7 = vld [vmem:[%s5189_s3 + $0x138] sm:$0xff]  }
  0x42   :  { %3575 = vmatprep.subr.bf16.mxu1 %v4085_v1  ;;  %3530 = vmatpush3.bf16.msra.mxu0 %v3888_v9  ;;  %v3905_v9 = vld [vmem:[%s5189_s3 + $0x130] sm:$0xff]  }
  0x43   :  { %3555 = vmatprep.subr.bf16.mxu0 %v4085_v1 }
  0xe3   :  { %v3331_v14 = vpop.f32.mrf.mxu0 }
  0xe4   :  { %v3359_v15 = vpop.f32.mrf.mxu1 }
  0xe5   :  { %v3332_v17 = vpop.f32.mrf.mxu0 }
  0xe6   :  { %v3333_v18 = vadd.f32 %v3332_v17, %v3331_v14  ;;  %v3360_v19 = vpop.f32.mrf.mxu1  ;;  %v3908_v14 = vld [vmem:[%s5189_s3 + $0x118] sm:$0xff]   ;;  %v3911_v17 = vld [vmem:[%s5189_s3 + $0x100] sm:$0xff]  }
  0xe7   :  { %v3334_v20 = vpop.f32.mrf.mxu0  ;;  %v3361_v24 = vadd.f32 %v3360_v19, %v3359_v15  ;;  %v3909_v15 = vld [vmem:[%s5189_s3 + $0x110] sm:$0xff]   ;;  %v3912_v19 = vld [vmem:[%s5189_s3 + $0x2b8] sm:$0xff]  }
  0xe8   :  { %v354_v21 = vadd.f32 %v3333_v18, %v126_v16  ;;  %v3362_v22 = vpop.f32.mrf.mxu1 }
  0xe9   :  { %v3335_v23 = vpop.f32.mrf.mxu0 }
  0xea   :  { %v3336_v25 = vadd.f32 %v3335_v23, %v3334_v20  ;;  %v3363_v26 = vpop.f32.mrf.mxu1  ;;  %v403_v28 = vadd.f32 %v3361_v24, %v354_v21  ;;  %v3913_v20 = vld [vmem:[%s5189_s3 + $0x2f8] sm:$0xff]   ;;  %v3914_v21 = vld [vmem:[%s5189_s3 + $0x2b0] sm:$0xff]   ;;  %v3916_v23 = vld [vmem:[%s5189_s3 + $0x2a8] sm:$0xff]  }
  0xeb   :  { %v3337_v27 = vpop.f32.mrf.mxu0  ;;  %v3364_v30 = vadd.f32 %v3363_v26, %v3362_v22  ;;  %v3915_v22 = vld [vmem:[%s5189_s3 + $0x2f0] sm:$0xff]   ;;  %v3917_v24 = vld [vmem:[%s5189_s3 + $0x2e8] sm:$0xff]   ;;  %v3919_v26 = vld [vmem:[%s5189_s3 + $0x2e0] sm:$0xff]  }
  0xec   :  { %v357_v29 = vadd.f32 %v3336_v25, %v126_v16  ;;  %v3365_v31 = vpop.f32.mrf.mxu1  ;;  %v417_v37 = vmax.f32 %v403_v28, 0.0  ;;  %v3918_v25 = vld [vmem:[%s5189_s3 + $0x2a0] sm:$0xff]   ;;  %v3921_v28 = vld [vmem:[%s5189_s3 + $0x2d8] sm:$0xff]  }
  0xed   :  { %v3338_v32 = vpop.f32.mrf.mxu0 }
  0xee   :  { %v406_v33 = vadd.f32 %v3364_v30, %v357_v29  ;;  %v3339_v34 = vadd.f32 %v3338_v32, %v3337_v27  ;;  %v3366_v35 = vpop.f32.mrf.mxu1  ;;  %v3920_v27 = vld [vmem:[%s5189_s3 + $0x298] sm:$0xff]   ;;  %v3922_v29 = vld [vmem:[%s5189_s3 + $0x290] sm:$0xff]   ;;  %v3925_v32 = vld [vmem:[%s5189_s3 + $0x2c8] sm:$0xff]  }
  0xef   :  { %v3340_v36 = vpop.f32.mrf.mxu0  ;;  %v3367_v44 = vadd.f32 %v3366_v35, %v3365_v31  ;;  %v3923_v30 = vld [vmem:[%s5189_s3 + $0x2d0] sm:$0xff]   ;;  %v3924_v31 = vld [vmem:[%s5189_s3 + $0x288] sm:$0xff]  }
  0xf0   :  { %v418_v38 = vmax.f32 %v406_v33, 0.0  ;;  %v362_v39 = vadd.f32 %v3339_v34, %v126_v16  ;;  %v3368_v40 = vpop.f32.mrf.mxu1  ;;  %v3926_v33 = vld [vmem:[%s5189_s3 + $0x280] sm:$0xff]  }
  0xf1   :  { %v3341_v41 = vpop.f32.mrf.mxu0  ;;  %v3927_v34 = vld [vmem:[%s5189_s3 + $0x2c0] sm:$0xff]  }
  0xf2   :  { %v4365_v43 = vpack.c.bf16 %v418_v38, %v417_v37  ;;  %v3342_v45 = vadd.f32 %v3341_v41, %v3340_v36  ;;  %v3369_v46 = vpop.f32.mrf.mxu1  ;;  %v411_v47 = vadd.f32 %v3367_v44, %v362_v39  ;;  %v1628_v44 = vld [vmem:[%s5191_s1] sm:$0x3] }
  0xf3   :  { %v3370_v49 = vadd.f32 %v3369_v46, %v3368_v40  ;;  %1630 = vrot.lane.b32.xlu0 %v1628_v44, %s4087_s30 }
  0xf4   :  { %v365_v48 = vadd.f32 %v3342_v45, %v126_v16  ;;  %3552 = vmatmul.mubr.bf16.vlgmr.msra.gmra.mxu1 %v4365_v43  ;;  %v419_v52 = vmax.f32 %v411_v47, 0.0  ;;  %v652_v8 = vrot.slane %v4365_v43, 1  ;;  %v3910_v16 = vld [vmem:[%s5189_s3 + $0x108] sm:$0xff]   ;;  %v873_v18 = vrot.slane %v4365_v43, 2 }
  0xf5   :  { %3576 = vmatpush3.bf16.msra.mxu1 %v3887_v42  ;;  %3591 = vmatprep.mubr.msk.bf16.mxu1 %vm4086_vm0, %v4085_v1 }
  0xf6   :  { %v414_v51 = vadd.f32 %v3370_v49, %v365_v48  ;;  %3577 = vmatprep.subr.bf16.mxu1 %v4085_v1 }
  0xf8   :  { %v420_v53 = vmax.f32 %v414_v51, 0.0 }
  0xf9   :  { %3578 = vmatpush3.bf16.msra.mxu1 %v3889_v50 }
  0xfa   :  { %v455_v56 = vpack.c.bf16 %v420_v53, %v419_v52  ;;  %3579 = vmatprep.subr.bf16.mxu1 %v4085_v1 }
  0xfc   :  { %3532 = vmatmul.mubr.bf16.vlgmr.msra.gmra.mxu0 %v455_v56  ;;  %v763_v5 = vrot.slane %v455_v56, 1 }
  0xfd   :  { %3556 = vmatpush3.bf16.msra.mxu0 %v3890_v54  ;;  %3580 = vmatpush3.bf16.msra.mxu1 %v3891_v55 }
  0xfe   :  { %3557 = vmatprep.subr.bf16.mxu0 %v4085_v1  ;;  %3581 = vmatprep.subr.bf16.mxu1 %v4085_v1 }
  0xff   :  { %3571 = vmatprep.mubr.msk.bf16.mxu0 %vm4086_vm0, %v4085_v1 }
 0x101   :  { %3558 = vmatpush3.bf16.msra.mxu0 %v3892_v57  ;;  %3582 = vmatpush3.bf16.msra.mxu1 %v3893_v58  ;;  %v968_v57 = vsub.s32 1, %v4353_v11 }
 0x102   :  { %3559 = vmatprep.subr.bf16.mxu0 %v4085_v1  ;;  %3583 = vmatprep.subr.bf16.mxu1 %v4085_v1 }
 0x105   :  { %3560 = vmatpush3.bf16.msra.mxu0 %v3894_v59  ;;  %3584 = vmatpush3.bf16.msra.mxu1 %v3895_v60  ;;  %v4544_v59 = vrot.slane %v4359_v13, %v968_v57 }
 0x106   :  { %3561 = vmatprep.subr.bf16.mxu0 %v4085_v1  ;;  %3585 = vmatprep.subr.bf16.mxu1 %v4085_v1 }
 0x109   :  { %3562 = vmatpush3.bf16.msra.mxu0 %v3896_v61  ;;  %3586 = vmatpush3.bf16.msra.mxu1 %v3897_v62 }
 0x10a   :  { %3563 = vmatprep.subr.bf16.mxu0 %v4085_v1  ;;  %3587 = vmatprep.subr.bf16.mxu1 %v4085_v1 }
 0x10d   :  { %3564 = vmatpush3.bf16.msra.mxu0 %v3898_v63  ;;  %3588 = vmatpush3.bf16.msra.mxu1 %v3899_v0 }
 0x10e   :  { %3565 = vmatprep.subr.bf16.mxu0 %v4085_v1  ;;  %3589 = vmatprep.subr.bf16.mxu1 %v4085_v1 }
 0x111   :  { %3566 = vmatpush3.bf16.msra.mxu0 %v3900_v2  ;;  %3590 = vmatpush3.bf16.msra.mxu1 %v3901_v3 }
 0x112   :  { %3567 = vmatprep.subr.bf16.mxu0 %v4085_v1  ;;  %3615 = vmatprep.subr.bf16.mxu1 %v4085_v1 }
 0x114   :  { %3592 = vmatmul.mubr.bf16.vlgmr.msra.gmra.mxu1 %v763_v5 }
 0x115   :  { %3568 = vmatpush3.bf16.msra.mxu0 %v3902_v4  ;;  %3631 = vmatprep.mubr.msk.bf16.mxu1 %vm4086_vm0, %v4085_v1  ;;  %v3928_v4 = vld [vmem:[%s5189_s3 + $0x378] sm:$0xff]  }
 0x116   :  { %3569 = vmatprep.subr.bf16.mxu0 %v4085_v1  ;;  %3616 = vmatpush3.bf16.msra.mxu1 %v3913_v20  ;;  %v3940_v20 = vld [vmem:[%s5189_s3 + $0x348] sm:$0xff]  }
 0x117   :  { %3617 = vmatprep.subr.bf16.mxu1 %v4085_v1 }
 0x119   :  { %3570 = vmatpush3.bf16.msra.mxu0 %v3903_v6  ;;  %v3929_v6 = vld [vmem:[%s5189_s3 + $0x338] sm:$0xff]  }
 0x11a   :  { %3595 = vmatprep.subr.bf16.mxu0 %v4085_v1  ;;  %3618 = vmatpush3.bf16.msra.mxu1 %v3915_v22  ;;  %v3942_v22 = vld [vmem:[%s5189_s3 + $0x340] sm:$0xff]  }
 0x11b   :  { %3619 = vmatprep.subr.bf16.mxu1 %v4085_v1 }
 0x11c   :  { %3572 = vmatmul.mubr.bf16.vlgmr.msra.gmra.mxu0 %v652_v8  ;;  %v3930_v8 = vld [vmem:[%s5189_s3 + $0x370] sm:$0xff]  }
 0x11d   :  { %3596 = vmatpush3.bf16.msra.mxu0 %v3904_v7  ;;  %3611 = vmatprep.mubr.msk.bf16.mxu0 %vm4086_vm0, %v4085_v1 }
 0x11e   :  { %3597 = vmatprep.subr.bf16.mxu0 %v4085_v1  ;;  %3620 = vmatpush3.bf16.msra.mxu1 %v3917_v24  ;;  %v3944_v24 = vld [vmem:[%s5189_s3 + $0x3f8] sm:$0xff]  }
 0x11f   :  { %3621 = vmatprep.subr.bf16.mxu1 %v4085_v1 }
 0x121   :  { %3598 = vmatpush3.bf16.msra.mxu0 %v3905_v9  ;;  %v3931_v9 = vld [vmem:[%s5189_s3 + $0x330] sm:$0xff]  }
 0x122   :  { %3599 = vmatprep.subr.bf16.mxu0 %v4085_v1  ;;  %3622 = vmatpush3.bf16.msra.mxu1 %v3919_v26  ;;  %v3945_v26 = vld [vmem:[%s5189_s3 + $0x3b8] sm:$0xff]  }
 0x123   :  { %3623 = vmatprep.subr.bf16.mxu1 %v4085_v1 }
 0x125   :  { %3600 = vmatpush3.bf16.msra.mxu0 %v3906_v10  ;;  %v3932_v10 = vld [vmem:[%s5189_s3 + $0x368] sm:$0xff]  }
 0x126   :  { %3601 = vmatprep.subr.bf16.mxu0 %v4085_v1  ;;  %3624 = vmatpush3.bf16.msra.mxu1 %v3921_v28  ;;  %v3946_v28 = vld [vmem:[%s5189_s3 + $0x3f0] sm:$0xff]  }
 0x127   :  { %3625 = vmatprep.subr.bf16.mxu1 %v4085_v1 }
 0x129   :  { %3602 = vmatpush3.bf16.msra.mxu0 %v3907_v12  ;;  %v3933_v12 = vld [vmem:[%s5189_s3 + $0x328] sm:$0xff]  }
 0x12a   :  { %3603 = vmatprep.subr.bf16.mxu0 %v4085_v1  ;;  %3626 = vmatpush3.bf16.msra.mxu1 %v3923_v30  ;;  %v3948_v30 = vld [vmem:[%s5189_s3 + $0x3e8] sm:$0xff]  }
 0x12b   :  { %3627 = vmatprep.subr.bf16.mxu1 %v4085_v1 }
 0x12d   :  { %3604 = vmatpush3.bf16.msra.mxu0 %v3908_v14  ;;  %v3934_v14 = vld [vmem:[%s5189_s3 + $0x360] sm:$0xff]  }
 0x12e   :  { %3605 = vmatprep.subr.bf16.mxu0 %v4085_v1  ;;  %3628 = vmatpush3.bf16.msra.mxu1 %v3925_v32  ;;  %v3950_v32 = vld [vmem:[%s5189_s3 + $0x3e0] sm:$0xff]  }
 0x12f   :  { %3629 = vmatprep.subr.bf16.mxu1 %v4085_v1 }
 0x131   :  { %3606 = vmatpush3.bf16.msra.mxu0 %v3909_v15  ;;  %v3935_v15 = vld [vmem:[%s5189_s3 + $0x320] sm:$0xff]  }
 0x132   :  { %3607 = vmatprep.subr.bf16.mxu0 %v4085_v1  ;;  %3630 = vmatpush3.bf16.msra.mxu1 %v3927_v34  ;;  %v3952_v34 = vld [vmem:[%s5189_s3 + $0x3d8] sm:$0xff]  }
 0x133   :  { %3655 = vmatprep.subr.bf16.mxu1 %v4085_v1 }
 0x135   :  { %3608 = vmatpush3.bf16.msra.mxu0 %v3910_v16  ;;  %v3936_v16 = vld [vmem:[%s5189_s3 + $0x358] sm:$0xff]  }
 0x136   :  { %3609 = vmatprep.subr.bf16.mxu0 %v4085_v1 }
 0x139   :  { %3610 = vmatpush3.bf16.msra.mxu0 %v3911_v17  ;;  %v3937_v17 = vld [vmem:[%s5189_s3 + $0x318] sm:$0xff]  }
 0x13a   :  { %3635 = vmatprep.subr.bf16.mxu0 %v4085_v1 }
 0x13c   :  { %3612 = vmatmul.mubr.bf16.vlgmr.msra.gmra.mxu0 %v873_v18  ;;  %v3938_v18 = vld [vmem:[%s5189_s3 + $0x350] sm:$0xff]  }
 0x13d   :  { %3651 = vmatprep.mubr.msk.bf16.mxu0 %vm4086_vm0, %v4085_v1  ;;  %3636 = vmatpush3.bf16.msra.mxu0 %v3912_v19  ;;  %v3939_v19 = vld [vmem:[%s5189_s3 + $0x310] sm:$0xff]  }
 0x13e   :  { %3637 = vmatprep.subr.bf16.mxu0 %v4085_v1 }
 0x141   :  { %3638 = vmatpush3.bf16.msra.mxu0 %v3914_v21  ;;  %v3941_v21 = vld [vmem:[%s5189_s3 + $0x308] sm:$0xff]  }
 0x142   :  { %3639 = vmatprep.subr.bf16.mxu0 %v4085_v1 }
 0x145   :  { %3640 = vmatpush3.bf16.msra.mxu0 %v3916_v23  ;;  %v3943_v23 = vld [vmem:[%s5189_s3 + $0x300] sm:$0xff]  }
 0x146   :  { %3641 = vmatprep.subr.bf16.mxu0 %v4085_v1 }
 0x149   :  { %3642 = vmatpush3.bf16.msra.mxu0 %v3918_v25 }
 0x14a   :  { %3643 = vmatprep.subr.bf16.mxu0 %v4085_v1 }
 0x14d   :  { %3644 = vmatpush3.bf16.msra.mxu0 %v3920_v27 }
 0x14e   :  { %3645 = vmatprep.subr.bf16.mxu0 %v4085_v1 }
 0x151   :  { %3646 = vmatpush3.bf16.msra.mxu0 %v3922_v29  ;;  %v3947_v29 = vld [vmem:[%s5189_s3 + $0x3b0] sm:$0xff]  }
 0x152   :  { %3647 = vmatprep.subr.bf16.mxu0 %v4085_v1 }
 0x155   :  { %3648 = vmatpush3.bf16.msra.mxu0 %v3924_v31  ;;  %v3949_v31 = vld [vmem:[%s5189_s3 + $0x3a8] sm:$0xff]  }
 0x156   :  { %3649 = vmatprep.subr.bf16.mxu0 %v4085_v1 }
 0x159   :  { %3650 = vmatpush3.bf16.msra.mxu0 %v3926_v33  ;;  %v3951_v33 = vld [vmem:[%s5189_s3 + $0x3a0] sm:$0xff]  }
 0x15a   :  { %3675 = vmatprep.subr.bf16.mxu0 %v4085_v1 }
 0x1b4   :  { %v627_v35 = vpop.f32.mrf.mxu1 }
 0x1b6   :  { %v3553_v36 = vpop.f32.mrf.mxu1 }
 0x1b7   :  { %v3953_v36 = vld [vmem:[%s5189_s3 + $0x398] sm:$0xff]  }
 0x1b8   :  { %v630_v37 = vpop.f32.mrf.mxu1 }
 0x1ba   :  { %v3554_v38 = vpop.f32.mrf.mxu1 }
 0x1bc   :  { %v538_v39 = vpop.f32.mrf.mxu0 }
 0x1bd   :  { %v628_v55 = vadd.f32 %v627_v35, %v538_v39  ;;  %v3955_v39 = vld [vmem:[%s5189_s3 + $0x390] sm:$0xff]  }
 0x1be   :  { %v3533_v40 = vpop.f32.mrf.mxu0 }
 0x1bf   :  { %v3956_v40 = vld [vmem:[%s5189_s3 + $0x3c8] sm:$0xff]  }
 0x1c0   :  { %v541_v41 = vpop.f32.mrf.mxu0 }
 0x1c1   :  { %v631_v42 = vadd.f32 %v630_v37, %v541_v41  ;;  %v3954_v37 = vld [vmem:[%s5189_s3 + $0x3d0] sm:$0xff]  }
 0x1c2   :  { %v3534_v43 = vpop.f32.mrf.mxu0 }
 0x1c3   :  { %v3958_v43 = vld [vmem:[%s5189_s3 + $0x3c0] sm:$0xff]  }
 0x1d4   :  { %v847_v45 = vpop.f32.mrf.mxu1 }
 0x1d6   :  { %v3593_v46 = vpop.f32.mrf.mxu1 }
 0x1d8   :  { %v850_v47 = vpop.f32.mrf.mxu1 }
 0x1da   :  { %v3594_v48 = vpop.f32.mrf.mxu1 }
 0x1db   :  { %v3962_v48 = vld [vmem:[%s5192_s5 + $0x3c] ss:$24 sps:$4 sm:$0xff]  }
 0x1dc   :  { %v736_v49 = vpop.f32.mrf.mxu0 }
 0x1dd   :  { %v743_v56 = vadd.f32 %v736_v49, %v628_v55  ;;  %v3963_v49 = vld [vmem:[%s5192_s5 + $0x30] ss:$24 sps:$4 sm:$0xff]  }
 0x1de   :  { %v3573_v50 = vpop.f32.mrf.mxu0 }
 0x1df   :  { %v854_v58 = vadd.f32 %v847_v45, %v743_v56  ;;  %v3959_v45 = vld [vmem:[%s5189_s3 + $0x380] sm:$0xff]   ;;  %v3965_v50 = vld [vmem:[%s5192_s5 + $0x34] ss:$24 sps:$4 sm:$0xff]  }
 0x1e0   :  { %v739_v51 = vpop.f32.mrf.mxu0 }
 0x1e1   :  { %v744_v52 = vadd.f32 %v739_v51, %v631_v42  ;;  %v3957_v42 = vld [vmem:[%s5189_s3 + $0x388] sm:$0xff]  }
 0x1e2   :  { %v3574_v53 = vpop.f32.mrf.mxu0  ;;  %v3966_v51 = vld [vmem:[%s5192_s5 + $0x8] ss:$24 sps:$4 sm:$0xff]  }
 0x1e3   :  { %v4540_v54 = vadd.f32 %v850_v47, %v744_v52  ;;  %v3960_v47 = vld [vmem:[%s5192_s5 + $0x38] ss:$24 sps:$4 sm:$0xff]   ;;  %v3968_v52 = vld [vmem:[%s5192_s5 + $0xc] ss:$24 sps:$4 sm:$0xff]  }
 0x1fc   :  { %v957_v60 = vpop.f32.mrf.mxu0 }
 0x1fd   :  { %v964_v61 = vadd.f32 %v957_v60, %v854_v58 }
 0x1fe   :  { %v3613_v62 = vpop.f32.mrf.mxu0 }
 0x1ff   :  { %v970_v63 = vadd.f32 %v4544_v59, %v964_v61 }
 0x200   :  { %v4547_v0 = vpop.f32.mrf.mxu0 }
 0x201   :  { %v972_v2 = vmax.f32 %v970_v63, 0.0  ;;  %v965_v35 = vadd.f32 %v4547_v0, %v4540_v54 }
 0x202   :  { %v3614_v3 = vpop.f32.mrf.mxu0 }
 0x203   :  { %v991_v5 = vpack.c.bf16 %v972_v2, %v972_v2  ;;  %v971_v38 = vadd.f32 %v4544_v59, %v965_v35  ;;  %v3972_v35 = vld [vmem:[%s5192_s5 + $0x40] ss:$24 sps:$4 sm:$0xff]  }
 0x205   :  { %3652 = vmatmul.mubr.bf16.vlgmr.msra.gmra.mxu0 %v991_v5  ;;  %v1010_v7 = vrot.slane %v991_v5, 1  ;;  %v1313_v25 = vrot.slane %v991_v5, 3  ;;  %v1205_v27 = vrot.slane %v991_v5, 2  ;;  %v973_v41 = vmax.f32 %v971_v38, 0.0  ;;  %v3979_v38 = vld [vmem:[%s5189_s3 + $0x178] sm:$0xff]  }
 0x206   :  { %3676 = vmatpush3.bf16.msra.mxu0 %v3928_v4  ;;  %3691 = vmatprep.mubr.msk.bf16.mxu0 %vm4086_vm0, %v4085_v1 }
 0x207   :  { %3632 = vmatmul.mubr.bf16.vlgmr.msra.gmra.mxu1 %v1010_v7  ;;  %3677 = vmatprep.subr.bf16.mxu0 %v4085_v1  ;;  %v1421_v44 = vpack.c.bf16 %v973_v41, %v973_v41  ;;  %v3978_v41 = vld [vmem:[%s5189_s3 + $0x1f8] sm:$0xff]  }
 0x208   :  { %3656 = vmatpush3.bf16.msra.mxu1 %v3929_v6  ;;  %3671 = vmatprep.mubr.msk.bf16.mxu1 %vm4086_vm0, %v4085_v1 }
 0x209   :  { %3657 = vmatprep.subr.bf16.mxu1 %v4085_v1  ;;  %v1529_v46 = vrot.slane %v1421_v44, 1 }
 0x20a   :  { %3678 = vmatpush3.bf16.msra.mxu0 %v3930_v8  ;;  %v1622_v8 = vsub.s32 2, %v4353_v11 }
 0x20b   :  { %3679 = vmatprep.subr.bf16.mxu0 %v4085_v1 }
 0x20c   :  { %3658 = vmatpush3.bf16.msra.mxu1 %v3931_v9 }
 0x20d   :  { %3659 = vmatprep.subr.bf16.mxu1 %v4085_v1 }
 0x20e   :  { %3680 = vmatpush3.bf16.msra.mxu0 %v3932_v10 }
 0x20f   :  { %3681 = vmatprep.subr.bf16.mxu0 %v4085_v1 }
 0x210   :  { %3660 = vmatpush3.bf16.msra.mxu1 %v3933_v12 }
 0x211   :  { %3661 = vmatprep.subr.bf16.mxu1 %v4085_v1 }
 0x212   :  { %3682 = vmatpush3.bf16.msra.mxu0 %v3934_v14 }
 0x213   :  { %3683 = vmatprep.subr.bf16.mxu0 %v4085_v1 }
 0x214   :  { %3662 = vmatpush3.bf16.msra.mxu1 %v3935_v15 }
 0x215   :  { %3663 = vmatprep.subr.bf16.mxu1 %v4085_v1 }
 0x216   :  { %3684 = vmatpush3.bf16.msra.mxu0 %v3936_v16  ;;  %v1623_v16 = vrot.slane %v4359_v13, %v1622_v8 }
 0x217   :  { %3685 = vmatprep.subr.bf16.mxu0 %v4085_v1 }
 0x218   :  { %3664 = vmatpush3.bf16.msra.mxu1 %v3937_v17 }
 0x219   :  { %3665 = vmatprep.subr.bf16.mxu1 %v4085_v1 }
 0x21a   :  { %3686 = vmatpush3.bf16.msra.mxu0 %v3938_v18 }
 0x21b   :  { %3687 = vmatprep.subr.bf16.mxu0 %v4085_v1 }
 0x21c   :  { %3666 = vmatpush3.bf16.msra.mxu1 %v3939_v19 }
 0x21d   :  { %3667 = vmatprep.subr.bf16.mxu1 %v4085_v1 }
 0x21e   :  { %3688 = vmatpush3.bf16.msra.mxu0 %v3940_v20 }
 0x21f   :  { %3689 = vmatprep.subr.bf16.mxu0 %v4085_v1 }
 0x220   :  { %3668 = vmatpush3.bf16.msra.mxu1 %v3941_v21 }
 0x221   :  { %3669 = vmatprep.subr.bf16.mxu1 %v4085_v1 }
 0x222   :  { %3690 = vmatpush3.bf16.msra.mxu0 %v3942_v22 }
 0x223   :  { %3715 = vmatprep.subr.bf16.mxu0 %v4085_v1 }
 0x224   :  { %3670 = vmatpush3.bf16.msra.mxu1 %v3943_v23 }
 0x225   :  { %3692 = vmatmul.mubr.bf16.vlgmr.msra.gmra.mxu0 %v1313_v25  ;;  %3695 = vmatprep.subr.bf16.mxu1 %v4085_v1 }
 0x226   :  { %3716 = vmatpush3.bf16.msra.mxu0 %v3944_v24  ;;  %3731 = vmatprep.mubr.msk.bf16.mxu0 %vm4086_vm0, %v4085_v1 }
 0x227   :  { %3672 = vmatmul.mubr.bf16.vlgmr.msra.gmra.mxu1 %v1205_v27  ;;  %3717 = vmatprep.subr.bf16.mxu0 %v4085_v1  ;;  %v3969_v27 = vld [vmem:[%s5192_s5] ss:$24 sps:$4 sm:$0xff]  }
 0x228   :  { %3696 = vmatpush3.bf16.msra.mxu1 %v3945_v26  ;;  %3711 = vmatprep.mubr.msk.bf16.mxu1 %vm4086_vm0, %v4085_v1  ;;  %v3971_v26 = vld [vmem:[%s5192_s5 + $0x4] ss:$24 sps:$4 sm:$0xff]  }
 0x229   :  { %3697 = vmatprep.subr.bf16.mxu1 %v4085_v1 }
 0x22a   :  { %3718 = vmatpush3.bf16.msra.mxu0 %v3946_v28  ;;  %v3974_v28 = vld [vmem:[%s5192_s5 + $0x44] ss:$24 sps:$4 sm:$0xff]  }
 0x22b   :  { %3719 = vmatprep.subr.bf16.mxu0 %v4085_v1 }
 0x22c   :  { %3698 = vmatpush3.bf16.msra.mxu1 %v3947_v29  ;;  %v4088_v29 = vmov 0  }
 0x22d   :  { %3699 = vmatprep.subr.bf16.mxu1 %v4085_v1 }
 0x22e   :  { %3720 = vmatpush3.bf16.msra.mxu0 %v3948_v30  ;;  %v1631_v30 = vpop.permute.xlu0 %1630 }
 0x22f   :  { %3721 = vmatprep.subr.bf16.mxu0 %v4085_v1 }
 0x230   :  { %3700 = vmatpush3.bf16.msra.mxu1 %v3949_v31 }
 0x231   :  { %3701 = vmatprep.subr.bf16.mxu1 %v4085_v1 }
 0x232   :  { %3722 = vmatpush3.bf16.msra.mxu0 %v3950_v32 }
 0x233   :  { %3723 = vmatprep.subr.bf16.mxu0 %v4085_v1 }
 0x234   :  { %3702 = vmatpush3.bf16.msra.mxu1 %v3951_v33 }
 0x235   :  { %3703 = vmatprep.subr.bf16.mxu1 %v4085_v1 }
 0x236   :  { %3724 = vmatpush3.bf16.msra.mxu0 %v3952_v34 }
 0x237   :  { %3725 = vmatprep.subr.bf16.mxu0 %v4085_v1 }
 0x238   :  { %3704 = vmatpush3.bf16.msra.mxu1 %v3953_v36 }
 0x239   :  { %3705 = vmatprep.subr.bf16.mxu1 %v4085_v1 }
 0x23a   :  { %3726 = vmatpush3.bf16.msra.mxu0 %v3954_v37  ;;  %v3977_v37 = vld [vmem:[%s5192_s5 + $0x14] ss:$24 sps:$4 sm:$0xff]  }
 0x23b   :  { %3727 = vmatprep.subr.bf16.mxu0 %v4085_v1 }
 0x23c   :  { %3706 = vmatpush3.bf16.msra.mxu1 %v3955_v39  ;;  %v3975_v39 = vld [vmem:[%s5192_s5 + $0x10] ss:$24 sps:$4 sm:$0xff]  }
 0x23d   :  { %3707 = vmatprep.subr.bf16.mxu1 %v4085_v1 }
 0x23e   :  { %3728 = vmatpush3.bf16.msra.mxu0 %v3956_v40  ;;  %v3981_v40 = vld [vmem:[%s5189_s3 + $0x170] sm:$0xff]  }
 0x23f   :  { %3729 = vmatprep.subr.bf16.mxu0 %v4085_v1 }
 0x240   :  { %3708 = vmatpush3.bf16.msra.mxu1 %v3957_v42  ;;  %v3980_v42 = vld [vmem:[%s5189_s3 + $0x1f0] sm:$0xff]  }
 0x241   :  { %3709 = vmatprep.subr.bf16.mxu1 %v4085_v1 }
 0x242   :  { %3730 = vmatpush3.bf16.msra.mxu0 %v3958_v43  ;;  %v3982_v43 = vld [vmem:[%s5189_s3 + $0x1e8] sm:$0xff]  }
 0x243   :  { %1754 = vmatprep.subr.bf16.mxu0 %v3965_v50  ;;  %v3989_v50 = vld [vmem:[%s5189_s3 + $0x150] sm:$0xff]  }
 0x244   :  { %3710 = vmatpush3.bf16.msra.mxu1 %v3959_v45  ;;  %v3984_v45 = vld [vmem:[%s5189_s3 + $0x1e0] sm:$0xff]  }
 0x245   :  { %3732 = vmatmul.mubr.bf16.vlgmr.msra.gmra.mxu0 %v1529_v46  ;;  %1795 = vmatprep.subr.bf16.mxu1 %v3962_v48  ;;  %v3985_v46 = vld [vmem:[%s5189_s3 + $0x160] sm:$0xff]   ;;  %v3987_v48 = vld [vmem:[%s5189_s3 + $0x158] sm:$0xff]  }
 0x246   :  { %1755 = vmatpush1.bf16.msra.mxu0 %v3963_v49  ;;  %1774 = vmatprep.mubr.bf16.mxu0 %v4088_v29  ;;  %v3988_v49 = vld [vmem:[%s5189_s3 + $0x1d0] sm:$0xff]  }
 0x247   :  { %3712 = vmatmul.mubr.bf16.vlgmr.msra.gmra.mxu1 %v1421_v44  ;;  %1756 = vmatprep.subr.bf16.mxu0 %v3971_v26  ;;  %v3983_v44 = vld [vmem:[%s5189_s3 + $0x168] sm:$0xff]  }
 0x248   :  { %1796 = vmatpush1.bf16.msra.mxu1 %v3960_v47  ;;  %1815 = vmatprep.mubr.bf16.mxu1 %v4088_v29  ;;  %v3986_v47 = vld [vmem:[%s5189_s3 + $0x1d8] sm:$0xff]  }
 0x249   :  { %1797 = vmatprep.subr.bf16.mxu1 %v3968_v52  ;;  %v3991_v52 = vld [vmem:[%s5189_s3 + $0x148] sm:$0xff]  }
 0x24a   :  { %1757 = vmatpush1.bf16.msra.mxu0 %v3969_v27 }
 0x24b   :  { %3755 = vmatprep.subr.bf16.mxu0 %v4085_v1 }
 0x24c   :  { %1798 = vmatpush1.bf16.msra.mxu1 %v3966_v51  ;;  %v3990_v51 = vld [vmem:[%s5189_s3 + $0x1c8] sm:$0xff]  }
 0x24d   :  { %1836 = vmatprep.subr.bf16.mxu1 %v3974_v28 }
 0x2c5   :  { %v1182_v53 = vpop.f32.mrf.mxu0 }
 0x2c7   :  { %v1094_v54 = vpop.f32.mrf.mxu1  ;;  %v3653_v55 = vpop.f32.mrf.mxu0 }
 0x2c8   :  { %v1183_v6 = vadd.f32 %v1182_v53, %v1094_v54  ;;  %v3992_v53 = vld [vmem:[%s5189_s3 + $0x1c0] sm:$0xff]   ;;  %v1656_v55 = vsub.s32 3, %v4353_v11 }
 0x2c9   :  { %v3633_v56 = vpop.f32.mrf.mxu1  ;;  %v1185_v57 = vpop.f32.mrf.mxu0  ;;  %v3993_v54 = vld [vmem:[%s5189_s3 + $0x140] sm:$0xff]  }
 0x2ca   :  { %v31_v56 = vld [vmem:[%s5190_s6 + $0x10] sm:$0x3f]  ;;  %v4810_v57 = vld [vmem:[%s5190_s6 + $0x8] sm:$0x3f] }
 0x2cb   :  { %v1097_v58 = vpop.f32.mrf.mxu1  ;;  %v3654_v59 = vpop.f32.mrf.mxu0 }
 0x2cc   :  { %v32_v58 = vld [vmem:[%s5190_s6 + $0x18] sm:$0x3f]  ;;  %v1657_v59 = vrot.slane %v4359_v13, %v1656_v55 }
 0x2cd   :  { %v3634_v60 = vpop.f32.mrf.mxu1 }
 0x2ce   :  { %v1665_v60 = vrot.slane %v31_v56, %v1656_v55  ;;  %v4015_v56 = vld [vmem:[%s5189_s3 + $0x190] sm:$0xff]  }
 0x2e5   :  { %v1397_v61 = vpop.f32.mrf.mxu0 }
 0x2e7   :  { %v1289_v62 = vpop.f32.mrf.mxu1  ;;  %v3693_v63 = vpop.f32.mrf.mxu0 }
 0x2e8   :  { %v1295_v7 = vadd.f32 %v1289_v62, %v1183_v6  ;;  %v1669_v62 = vrot.slane %v32_v58, %v1656_v55  ;;  %v33_v6 = vld [vmem:[%s5190_s6 + $0x20] sm:$0x3f]  ;;  %v4016_v58 = vld [vmem:[%s5189_s3 + $0x188] sm:$0xff]  }
 0x2e9   :  { %v3673_v0 = vpop.f32.mrf.mxu1  ;;  %v1400_v2 = vpop.f32.mrf.mxu0 }
 0x2ea   :  { %v1403_v10 = vadd.f32 %v1397_v61, %v1295_v7  ;;  %v1661_v61 = vrot.slane %v4810_v57, %v1656_v55 }
 0x2eb   :  { %v1292_v3 = vpop.f32.mrf.mxu1  ;;  %v3694_v4 = vpop.f32.mrf.mxu0 }
 0x2ed   :  { %v3674_v5 = vpop.f32.mrf.mxu1 }
 0x305   :  { %v1613_v9 = vpop.f32.mrf.mxu0 }
 0x307   :  { %v1504_v12 = vpop.f32.mrf.mxu1  ;;  %v3733_v14 = vpop.f32.mrf.mxu0 }
 0x308   :  { %v1510_v15 = vadd.f32 %v1504_v12, %v1403_v10  ;;  %v34_v10 = vld [vmem:[%s5190_s6 + $0x28] sm:$0x3f]  ;;  %v1673_v12 = vrot.slane %v33_v6, %v1656_v55 }
 0x309   :  { %v3713_v17 = vpop.f32.mrf.mxu1  ;;  %v1616_v18 = vpop.f32.mrf.mxu0  ;;  %v4986_v6 = vld [vmem:[%s5194_s4 + $0xac] ss:$16 sps:$4 sm:$0xff]  }
 0x30a   :  { %v1619_v19 = vadd.f32 %v1613_v9, %v1510_v15 }
 0x30b   :  { %v1507_v20 = vpop.f32.mrf.mxu1  ;;  %v3734_v21 = vpop.f32.mrf.mxu0 }
 0x30c   :  { %v1624_v22 = vadd.f32 %v1623_v16, %v1619_v19  ;;  %v1677_v16 = vrot.slane %v34_v10, %v1656_v55  ;;  %v4014_v55 = vld [vmem:[%s5189_s3 + $0x198] sm:$0xff]  }
 0x30d   :  { %v3714_v23 = vpop.f32.mrf.mxu1  ;;  %v5015_v10 = vld [vmem:[%s5194_s4 + $0x88] ss:$16 sps:$4 sm:$0xff]  }
 0x30e   :  { %v1625_v24 = vmul.f32 0.5, %v1624_v22  ;;  %1640 = vst.msk [vmem:[%s5193_s8] sm:$0x3] %vm1639_vm1, %v1624_v22  ;;  %s4089_s8 = smov 96   ;;  %v1875_v23 = vld [vmem:[#allocation2 + $0x10] sm:$0xf] }
 0x310   :  { %v1626_v25 = vmul.f32 1.442695, %v1625_v24  ;;  %v1894_v24 = vpack.c.bf16 %v1875_v23, %v1875_v23  ;;  %v5084_v23 = vld [vmem:[%s5194_s4 + $0x20] ss:$16 sps:$4 sm:$0xff]  }
 0x312   :  { %4066 = vpow2.f32 %v1626_v25  ;;  %v1916_v28 = vrot.slane %v1894_v24, 1 }
 0x31f   :  { %v4067_v31 = vpop.eup %4066 }
 0x320   :  { %v1633_v32 = vmul.f32 %v4067_v31, %v1631_v30  ;;  %v2010_v30 = vrot.slane %v1894_v24, 2  ;;  %v5089_v24 = vld [vmem:[%s5194_s4 + $0x28] ss:$16 sps:$4 sm:$0xff]  }
 0x322   :  { %1635 = vrot.lane.b32.xlu0 %v1633_v32, %s4089_s8 }
 0x394   :  { %v1636_v33 = vpop.permute.xlu0 %1635 }
 0x395   :  { %v1638_v34 = vadd.f32 %v1636_v33, %v1624_v22  ;;  %v3994_v33 = vld [vmem:[%s5189_s3 + $0x278] sm:$0xff]  }
 0x397   :  { %v1653_v36 = vpack.c.bf16 %v1638_v34, %v1638_v34  ;;  %v3995_v34 = vld [vmem:[%s5189_s3 + $0x238] sm:$0xff]  }
 0x399   :  { %3156 = vmatmul.mubr.msk.bf16.vlgmr.msra.gmra.mxu0 %vm1738_vm2, %v1653_v36  ;;  %3157 = vmatmul.mubr.msk.bf16.vlgmr.msra.gmra.mxu1 %vm1738_vm2, %v1653_v36 }
 0x39a   :  { %1837 = vmatpush1.bf16.msra.mxu1 %v3972_v35  ;;  %1856 = vmatprep.mubr.bf16.mxu1 %v4088_v29 }
 0x39b   :  { %1838 = vmatprep.subr.bf16.mxu1 %v3977_v37  ;;  %3756 = vmatpush3.bf16.msra.mxu0 %v3979_v38  ;;  %v3996_v37 = vld [vmem:[%s5189_s3 + $0x270] sm:$0xff]  }
 0x39c   :  { %3757 = vmatprep.subr.bf16.mxu0 %v4085_v1  ;;  %3771 = vmatprep.mubr.msk.bf16.mxu0 %vm4086_vm0, %v4085_v1  ;;  %v3997_v38 = vld [vmem:[%s5189_s3 + $0x230] sm:$0xff]  }
 0x39e   :  { %1839 = vmatpush1.bf16.msra.mxu1 %v3975_v39  ;;  %v3998_v39 = vld [vmem:[%s5189_s3 + $0x268] sm:$0xff]  }
 0x39f   :  { %3735 = vmatprep.subr.bf16.mxu1 %v4085_v1  ;;  %3758 = vmatpush3.bf16.msra.mxu0 %v3981_v40  ;;  %v3999_v40 = vld [vmem:[%s5189_s3 + $0x228] sm:$0xff]  }
 0x3a0   :  { %3759 = vmatprep.subr.bf16.mxu0 %v4085_v1 }
 0x3a1   :  { %3158 = vmatmul.mubr.msk.bf16.vlgmr.msra.gmra.mxu1 %vm1738_vm2, %v1653_v36 }
 0x3a2   :  { %3736 = vmatpush3.bf16.msra.mxu1 %v3978_v41  ;;  %3751 = vmatprep.mubr.msk.bf16.mxu1 %vm4086_vm0, %v4085_v1  ;;  %v4000_v41 = vld [vmem:[%s5189_s3 + $0x260] sm:$0xff]  }
 0x3a3   :  { %3737 = vmatprep.subr.bf16.mxu1 %v4085_v1  ;;  %3760 = vmatpush3.bf16.msra.mxu0 %v3983_v44  ;;  %v4003_v44 = vld [vmem:[%s5189_s3 + $0x218] sm:$0xff]  }
 0x3a4   :  { %3761 = vmatprep.subr.bf16.mxu0 %v4085_v1 }
 0x3a6   :  { %3738 = vmatpush3.bf16.msra.mxu1 %v3980_v42  ;;  %v4001_v42 = vld [vmem:[%s5189_s3 + $0x220] sm:$0xff]  }
 0x3a7   :  { %3739 = vmatprep.subr.bf16.mxu1 %v4085_v1  ;;  %3762 = vmatpush3.bf16.msra.mxu0 %v3985_v46  ;;  %v4005_v46 = vld [vmem:[%s5189_s3 + $0x210] sm:$0xff]  }
 0x3a8   :  { %3763 = vmatprep.subr.bf16.mxu0 %v4085_v1 }
 0x3aa   :  { %3740 = vmatpush3.bf16.msra.mxu1 %v3982_v43  ;;  %v4002_v43 = vld [vmem:[%s5189_s3 + $0x258] sm:$0xff]  }
 0x3ab   :  { %3741 = vmatprep.subr.bf16.mxu1 %v4085_v1  ;;  %3764 = vmatpush3.bf16.msra.mxu0 %v3987_v48  ;;  %v4007_v48 = vld [vmem:[%s5189_s3 + $0x208] sm:$0xff]  }
 0x3ac   :  { %3765 = vmatprep.subr.bf16.mxu0 %v4085_v1 }
 0x3ae   :  { %3742 = vmatpush3.bf16.msra.mxu1 %v3984_v45  ;;  %v4004_v45 = vld [vmem:[%s5189_s3 + $0x250] sm:$0xff]  }
 0x3af   :  { %3743 = vmatprep.subr.bf16.mxu1 %v4085_v1  ;;  %3766 = vmatpush3.bf16.msra.mxu0 %v3989_v50  ;;  %v4009_v50 = vld [vmem:[%s5189_s3 + $0x200] sm:$0xff]  }
 0x3b0   :  { %3767 = vmatprep.subr.bf16.mxu0 %v4085_v1 }
 0x3b2   :  { %3744 = vmatpush3.bf16.msra.mxu1 %v3986_v47  ;;  %v4006_v47 = vld [vmem:[%s5189_s3 + $0x248] sm:$0xff]  }
 0x3b3   :  { %3745 = vmatprep.subr.bf16.mxu1 %v4085_v1  ;;  %3768 = vmatpush3.bf16.msra.mxu0 %v3991_v52  ;;  %v4011_v52 = vld [vmem:[%s5189_s3 + $0x1b0] sm:$0xff]  }
 0x3b4   :  { %3769 = vmatprep.subr.bf16.mxu0 %v4085_v1 }
 0x3b6   :  { %3746 = vmatpush3.bf16.msra.mxu1 %v3988_v49  ;;  %v4008_v49 = vld [vmem:[%s5189_s3 + $0x240] sm:$0xff]  }
 0x3b7   :  { %3747 = vmatprep.subr.bf16.mxu1 %v4085_v1  ;;  %3770 = vmatpush3.bf16.msra.mxu0 %v3993_v54  ;;  %v4013_v54 = vld [vmem:[%s5189_s3 + $0x1a0] sm:$0xff]  }
 0x3b8   :  { %3795 = vmatprep.subr.bf16.mxu0 %v4085_v1 }
 0x3ba   :  { %3748 = vmatpush3.bf16.msra.mxu1 %v3990_v51  ;;  %v4010_v51 = vld [vmem:[%s5189_s3 + $0x1b8] sm:$0xff]  }
 0x3bb   :  { %3749 = vmatprep.subr.bf16.mxu1 %v4085_v1 }
 0x3be   :  { %3750 = vmatpush3.bf16.msra.mxu1 %v3992_v53  ;;  %v4012_v53 = vld [vmem:[%s5189_s3 + $0x1a8] sm:$0xff]  }
 0x3bf   :  { %3775 = vmatprep.subr.bf16.mxu1 %v4085_v1 }
 0x459   :  { %v1776_v63 = vpop.f32.mrf.mxu0  ;;  %v1817_v0 = vpop.f32.mrf.mxu1 }
 0x45a   :  { %v1777_v2 = vadd.f32 %v1776_v63, %v1657_v59  ;;  %v1818_v3 = vadd.f32 %v1817_v0, %v1665_v60  ;;  %v4017_v59 = vld [vmem:[%s5189_s3 + $0x180] sm:$0xff]  }
 0x45b   :  { %v1778_v4 = vpop.f32.mrf.mxu0  ;;  %v1819_v5 = vpop.f32.mrf.mxu1  ;;  %v4933_v60 = vld [vmem:[%s5194_s4 + $0xe0] ss:$16 sps:$4 sm:$0xff]   ;;  %v4957_v0 = vld [vmem:[%s5194_s4 + $0xc4] ss:$16 sps:$4 sm:$0xff]  }
 0x45c   :  { %1867 = vst [vmem:[#allocation2 + $0x4] sm:$0x3] %v1777_v2  ;;  %1869 = vst [vmem:[#allocation2 + $0x8] sm:$0x3] %v1818_v3  ;;  %v1779_v7 = vadd.f32 %v1778_v4, %v1661_v61  ;;  %v1820_v8 = vadd.f32 %v1819_v5, %v1669_v62  ;;  %v4938_v61 = vld [vmem:[%s5194_s4 + $0xe4] ss:$16 sps:$4 sm:$0xff]  }
 0x45d   :  { %v1780_v9 = vpop.f32.mrf.mxu0  ;;  %v1821_v13 = vpop.f32.mrf.mxu1  ;;  %v4943_v62 = vld [vmem:[%s5194_s4 + $0xe8] ss:$16 sps:$4 sm:$0xff]   ;;  %v4952_v63 = vld [vmem:[%s5194_s4 + $0xc0] ss:$16 sps:$4 sm:$0xff]   ;;  %v4970_v3 = vld [vmem:[%s5194_s4 + $0xcc] ss:$16 sps:$4 sm:$0xff]  }
 0x45e   :  { %1868 = vst [vmem:[#allocation2 + $0x6] sm:$0x3] %v1779_v7  ;;  %1870 = vst [vmem:[#allocation2 + $0xa] sm:$0x3] %v1820_v8  ;;  %v4963_v2 = vld [vmem:[%s5194_s4 + $0xc8] ss:$16 sps:$4 sm:$0xff]  }
 0x45f   :  { %v1781_v14 = vpop.f32.mrf.mxu0  ;;  %v1822_v15 = vpop.f32.mrf.mxu1  ;;  %v4975_v4 = vld [vmem:[%s5194_s4 + $0xa4] ss:$16 sps:$4 sm:$0xff]   ;;  %v4981_v5 = vld [vmem:[%s5194_s4 + $0xa0] ss:$16 sps:$4 sm:$0xff]   ;;  %v4992_v7 = vld [vmem:[%s5194_s4 + $0xa8] ss:$16 sps:$4 sm:$0xff]  }
 0x460   :  { %v4999_v8 = vld [vmem:[%s5194_s4 + $0x84] ss:$16 sps:$4 sm:$0xff]   ;;  %v5005_v9 = vld [vmem:[%s5194_s4 + $0x8c] ss:$16 sps:$4 sm:$0xff]   ;;  %v5010_v13 = vld [vmem:[%s5194_s4 + $0x80] ss:$16 sps:$4 sm:$0xff]  }
 0x461   :  { %v1858_v17 = vpop.f32.mrf.mxu1  ;;  %v5028_v14 = vld [vmem:[%s5194_s4 + $0x6c] ss:$16 sps:$4 sm:$0xff]   ;;  %v5034_v15 = vld [vmem:[%s5194_s4 + $0x60] ss:$16 sps:$4 sm:$0xff]  }
 0x462   :  { %v1859_v18 = vadd.f32 %v1858_v17, %v1673_v12  ;;  %v5021_v12 = vld [vmem:[%s5194_s4 + $0x64] ss:$16 sps:$4 sm:$0xff]  }
 0x463   :  { %v1860_v19 = vpop.f32.mrf.mxu1  ;;  %v5050_v17 = vld [vmem:[%s5194_s4 + $0x44] ss:$16 sps:$4 sm:$0xff]  }
 0x464   :  { %1871 = vst [vmem:[#allocation2 + $0xc] sm:$0x3] %v1859_v18  ;;  %v1861_v20 = vadd.f32 %v1860_v19, %v1677_v16  ;;  %v5042_v16 = vld [vmem:[%s5194_s4 + $0x68] ss:$16 sps:$4 sm:$0xff]   ;;  %v5055_v18 = vld [vmem:[%s5194_s4 + $0x4c] ss:$16 sps:$4 sm:$0xff]  }
 0x465   :  { %v1862_v21 = vpop.f32.mrf.mxu1  ;;  %v1873_v25 = vld [vmem:[#allocation2] sm:$0xff] }
 0x466   :  { %1872 = vst [vmem:[#allocation2 + $0xe] sm:$0x3] %v1861_v20  ;;  %v5060_v19 = vld [vmem:[%s5194_s4 + $0x40] ss:$16 sps:$4 sm:$0xff]   ;;  %v5065_v20 = vld [vmem:[%s5194_s4 + $0x48] ss:$16 sps:$4 sm:$0xff]  }
 0x467   :  { %v1863_v22 = vpop.f32.mrf.mxu1  ;;  %v5074_v21 = vld [vmem:[%s5194_s4 + $0x24] ss:$16 sps:$4 sm:$0xff]  }
 0x468   :  { %v5079_v22 = vld [vmem:[%s5194_s4 + $0x2c] ss:$16 sps:$4 sm:$0xff]  }
 0x46d   :  { %v1874_v26 = vld [vmem:[#allocation2 + $0x8] sm:$0xff] }
 0x46e   :  { %v1893_v27 = vpack.c.bf16 %v1874_v26, %v1873_v25  ;;  %v5098_v25 = vld [vmem:[%s5194_s4 + $0x4] ss:$16 sps:$4 sm:$0xff]   ;;  %v5103_v26 = vld [vmem:[%s5194_s4 + $0xc] ss:$16 sps:$4 sm:$0xff]  }
 0x470   :  { %v1915_v31 = vrot.slane %v1893_v27, 1  ;;  %v2009_v32 = vrot.slane %v1893_v27, 2 }
 0x472   :  { %v1917_v35 = vsel %vm1914_vm3, %v1915_v31, %v1916_v28  ;;  %v4830_v36 = vsel %vm2008_vm4, %v2009_v32, %v2010_v30  ;;  %v5113_v28 = vld [vmem:[%s5194_s4 + $0x8] ss:$16 sps:$4 sm:$0xff]  }
 0x473   :  { %3752 = vmatmul.mubr.bf16.vlgmr.msra.gmra.mxu1 %v1917_v35  ;;  %3772 = vmatmul.mubr.bf16.vlgmr.msra.gmra.mxu0 %v4830_v36 }
 0x474   :  { %3776 = vmatpush3.bf16.msra.mxu1 %v3994_v33  ;;  %3796 = vmatpush3.bf16.msra.mxu0 %v3995_v34 }
 0x475   :  { %3777 = vmatprep.subr.bf16.mxu1 %v4085_v1  ;;  %3797 = vmatprep.subr.bf16.mxu0 %v4085_v1 }
 0x476   :  { %3791 = vmatprep.mubr.msk.bf16.mxu1 %vm4086_vm0, %v4085_v1  ;;  %3811 = vmatprep.mubr.msk.bf16.mxu0 %vm4086_vm0, %v4085_v1 }
 0x478   :  { %3778 = vmatpush3.bf16.msra.mxu1 %v3996_v37  ;;  %3798 = vmatpush3.bf16.msra.mxu0 %v3997_v38  ;;  %v2212_v38 = vsub.s32 4, %v4353_v11 }
 0x479   :  { %3779 = vmatprep.subr.bf16.mxu1 %v4085_v1  ;;  %3799 = vmatprep.subr.bf16.mxu0 %v4085_v1 }
 0x47c   :  { %3780 = vmatpush3.bf16.msra.mxu1 %v3998_v39  ;;  %3800 = vmatpush3.bf16.msra.mxu0 %v3999_v40 }
 0x47d   :  { %3781 = vmatprep.subr.bf16.mxu1 %v4085_v1  ;;  %3801 = vmatprep.subr.bf16.mxu0 %v4085_v1 }
 0x480   :  { %3782 = vmatpush3.bf16.msra.mxu1 %v4000_v41  ;;  %3802 = vmatpush3.bf16.msra.mxu0 %v4001_v42 }
 0x481   :  { %3783 = vmatprep.subr.bf16.mxu1 %v4085_v1  ;;  %3803 = vmatprep.subr.bf16.mxu0 %v4085_v1 }
 0x484   :  { %3784 = vmatpush3.bf16.msra.mxu1 %v4002_v43  ;;  %3804 = vmatpush3.bf16.msra.mxu0 %v4003_v44  ;;  %v5124_v43 = vld [vmem:[%s5190_s6] sm:$0x3f] }
 0x485   :  { %3785 = vmatprep.subr.bf16.mxu1 %v4085_v1  ;;  %3805 = vmatprep.subr.bf16.mxu0 %v4085_v1  ;;  %v2213_v44 = vrot.slane %v5124_v43, %v2212_v38 }
 0x488   :  { %3786 = vmatpush3.bf16.msra.mxu1 %v4004_v45  ;;  %3806 = vmatpush3.bf16.msra.mxu0 %v4005_v46 }
 0x489   :  { %3787 = vmatprep.subr.bf16.mxu1 %v4085_v1  ;;  %3807 = vmatprep.subr.bf16.mxu0 %v4085_v1 }
 0x48c   :  { %3788 = vmatpush3.bf16.msra.mxu1 %v4006_v47  ;;  %3808 = vmatpush3.bf16.msra.mxu0 %v4007_v48 }
 0x48d   :  { %3789 = vmatprep.subr.bf16.mxu1 %v4085_v1  ;;  %3809 = vmatprep.subr.bf16.mxu0 %v4085_v1 }
 0x490   :  { %3790 = vmatpush3.bf16.msra.mxu1 %v4008_v49  ;;  %3810 = vmatpush3.bf16.msra.mxu0 %v4009_v50 }
 0x491   :  { %3815 = vmatprep.subr.bf16.mxu1 %v4085_v1  ;;  %2635 = vmatprep.subr.bf16.mxu0 %v4938_v61 }
 0x493   :  { %3792 = vmatmul.mubr.bf16.vlgmr.msra.gmra.mxu1 %v1893_v27  ;;  %3812 = vmatmul.mubr.bf16.vlgmr.msra.gmra.mxu0 %v1915_v31  ;;  %v5108_v27 = vld [vmem:[%s5194_s4] ss:$16 sps:$4 sm:$0xff]  }
 0x494   :  { %3816 = vmatpush3.bf16.msra.mxu1 %v4010_v51  ;;  %3831 = vmatprep.mubr.msk.bf16.mxu1 %vm4086_vm0, %v4085_v1 }
 0x495   :  { %3817 = vmatprep.subr.bf16.mxu1 %v4085_v1  ;;  %2667 = vmatprep.mubr.bf16.mxu0 %v4088_v29 }
 0x496   :  { %2636 = vmatpush1.bf16.msra.mxu0 %v4933_v60 }
 0x497   :  { %2637 = vmatprep.subr.bf16.mxu0 %v4957_v0 }
 0x498   :  { %3818 = vmatpush3.bf16.msra.mxu1 %v4011_v52 }
 0x499   :  { %3819 = vmatprep.subr.bf16.mxu1 %v4085_v1 }
 0x49a   :  { %2638 = vmatpush1.bf16.msra.mxu0 %v4952_v63 }
 0x49b   :  { %2639 = vmatprep.subr.bf16.mxu0 %v4975_v4 }
 0x49c   :  { %3820 = vmatpush3.bf16.msra.mxu1 %v4012_v53 }
 0x49d   :  { %3821 = vmatprep.subr.bf16.mxu1 %v4085_v1 }
 0x49e   :  { %2640 = vmatpush1.bf16.msra.mxu0 %v4981_v5 }
 0x49f   :  { %2641 = vmatprep.subr.bf16.mxu0 %v4999_v8 }
 0x4a0   :  { %3822 = vmatpush3.bf16.msra.mxu1 %v4013_v54 }
 0x4a1   :  { %3823 = vmatprep.subr.bf16.mxu1 %v4085_v1 }
 0x4a2   :  { %2642 = vmatpush1.bf16.msra.mxu0 %v5010_v13 }
 0x4a3   :  { %2643 = vmatprep.subr.bf16.mxu0 %v5021_v12 }
 0x4a4   :  { %3824 = vmatpush3.bf16.msra.mxu1 %v4014_v55 }
 0x4a5   :  { %3825 = vmatprep.subr.bf16.mxu1 %v4085_v1 }
 0x4a6   :  { %2644 = vmatpush1.bf16.msra.mxu0 %v5034_v15 }
 0x4a7   :  { %2645 = vmatprep.subr.bf16.mxu0 %v5050_v17 }
 0x4a8   :  { %3826 = vmatpush3.bf16.msra.mxu1 %v4015_v56 }
 0x4a9   :  { %3827 = vmatprep.subr.bf16.mxu1 %v4085_v1 }
 0x4aa   :  { %2646 = vmatpush1.bf16.msra.mxu0 %v5060_v19 }
 0x4ab   :  { %2647 = vmatprep.subr.bf16.mxu0 %v5074_v21 }
 0x4ac   :  { %3828 = vmatpush3.bf16.msra.mxu1 %v4016_v58 }
 0x4ad   :  { %3829 = vmatprep.subr.bf16.mxu1 %v4085_v1  ;;  %v4023_v1 = vld [vmem:[%s5194_s4 + $0xec] ss:$16 sps:$4 sm:$0xff]  }
 0x4ae   :  { %2648 = vmatpush1.bf16.msra.mxu0 %v5084_v23 }
 0x4af   :  { %2649 = vmatprep.subr.bf16.mxu0 %v5098_v25 }
 0x4b0   :  { %3830 = vmatpush3.bf16.msra.mxu1 %v4017_v59 }
 0x4b1   :  { %2678 = vmatprep.subr.bf16.mxu1 %v4023_v1 }
 0x4b2   :  { %2650 = vmatpush1.bf16.msra.mxu0 %v5108_v27 }
 0x4b3   :  { %3832 = vmatmul.mubr.bf16.vlgmr.msra.gmra.mxu1 %v4830_v36  ;;  %2722 = vmatprep.subr.bf16.mxu0 %v4023_v1 }
 0x4b4   :  { %2710 = vmatprep.mubr.bf16.mxu1 %v4088_v29  ;;  %2679 = vmatpush1.bf16.msra.mxu1 %v4943_v62 }
 0x4b5   :  { %2680 = vmatprep.subr.bf16.mxu1 %v4970_v3 }
 0x4b8   :  { %2681 = vmatpush1.bf16.msra.mxu1 %v4963_v2 }
 0x4b9   :  { %2682 = vmatprep.subr.bf16.mxu1 %v4986_v6 }
 0x4bc   :  { %2683 = vmatpush1.bf16.msra.mxu1 %v4992_v7 }
 0x4bd   :  { %2684 = vmatprep.subr.bf16.mxu1 %v5005_v9 }
 0x4c0   :  { %2685 = vmatpush1.bf16.msra.mxu1 %v5015_v10 }
 0x4c1   :  { %2686 = vmatprep.subr.bf16.mxu1 %v5028_v14 }
 0x4c4   :  { %2687 = vmatpush1.bf16.msra.mxu1 %v5042_v16 }
 0x4c5   :  { %2688 = vmatprep.subr.bf16.mxu1 %v5055_v18 }
 0x4c8   :  { %2689 = vmatpush1.bf16.msra.mxu1 %v5065_v20 }
 0x4c9   :  { %2690 = vmatprep.subr.bf16.mxu1 %v5079_v22 }
 0x4cc   :  { %2691 = vmatpush1.bf16.msra.mxu1 %v5089_v24 }
 0x4cd   :  { %2692 = vmatprep.subr.bf16.mxu1 %v5103_v26 }
 0x4d0   :  { %2693 = vmatpush1.bf16.msra.mxu1 %v5113_v28 }
 0x4d1   :  { %2772 = vmatprep.subr.bf16.mxu1 %v4938_v61 }
 0x533   :  { %v2001_v30 = vpop.f32.mrf.mxu1  ;;  %v2095_v31 = vpop.f32.mrf.mxu0 }
 0x534   :  { %v2096_v39 = vadd.f32 %v2095_v31, %v2001_v30 }
 0x535   :  { %v3753_v32 = vpop.f32.mrf.mxu1  ;;  %v3773_v33 = vpop.f32.mrf.mxu0 }
 0x537   :  { %v2004_v34 = vpop.f32.mrf.mxu1  ;;  %v2098_v35 = vpop.f32.mrf.mxu0 }
 0x538   :  { %v2099_v47 = vadd.f32 %v2098_v35, %v2004_v34 }
 0x539   :  { %v3754_v36 = vpop.f32.mrf.mxu1  ;;  %v3774_v37 = vpop.f32.mrf.mxu0 }
 0x553   :  { %v2201_v40 = vpop.f32.mrf.mxu1  ;;  %v2335_v41 = vpop.f32.mrf.mxu0 }
 0x554   :  { %v2208_v42 = vadd.f32 %v2201_v40, %v2096_v39 }
 0x555   :  { %v3793_v45 = vpop.f32.mrf.mxu1  ;;  %v3813_v46 = vpop.f32.mrf.mxu0 }
 0x556   :  { %v2214_v50 = vadd.f32 %v2213_v44, %v2208_v42 }
 0x557   :  { %v2204_v48 = vpop.f32.mrf.mxu1  ;;  %v2338_v49 = vpop.f32.mrf.mxu0 }
 0x558   :  { %v2209_v51 = vadd.f32 %v2204_v48, %v2099_v47  ;;  %v2216_v55 = vmax.f32 %v2214_v50, 0.0 }
 0x559   :  { %v3794_v52 = vpop.f32.mrf.mxu1  ;;  %v3814_v53 = vpop.f32.mrf.mxu0 }
 0x55a   :  { %v2215_v54 = vadd.f32 %v2213_v44, %v2209_v51 }
 0x55c   :  { %v2217_v56 = vmax.f32 %v2215_v54, 0.0 }
 0x55e   :  { %v2474_v58 = vpack.c.bf16 %v2217_v56, %v2216_v55 }
 0x560   :  { %2668 = vmatmul.mubr.bf16.vlgmr.msra.gmra.mxu0 %v2474_v58  ;;  %2711 = vmatmul.mubr.bf16.vlgmr.msra.gmra.mxu1 %v2474_v58 }
 0x561   :  { %2723 = vmatpush1.bf16.msra.mxu0 %v4943_v62  ;;  %2773 = vmatpush1.bf16.msra.mxu1 %v4933_v60 }
 0x562   :  { %2724 = vmatprep.subr.bf16.mxu0 %v4970_v3  ;;  %2774 = vmatprep.subr.bf16.mxu1 %v4957_v0 }
 0x563   :  { %2754 = vmatprep.mubr.bf16.mxu0 %v4088_v29  ;;  %2804 = vmatprep.mubr.bf16.mxu1 %v4088_v29 }
 0x565   :  { %2725 = vmatpush1.bf16.msra.mxu0 %v4963_v2  ;;  %2775 = vmatpush1.bf16.msra.mxu1 %v4952_v63 }
 0x566   :  { %2726 = vmatprep.subr.bf16.mxu0 %v4986_v6  ;;  %2776 = vmatprep.subr.bf16.mxu1 %v4975_v4  ;;  %v2441_v4 = vld [vmem:[#allocation3 + $0x10] sm:$0x3] }
 0x569   :  { %2727 = vmatpush1.bf16.msra.mxu0 %v4992_v7  ;;  %2777 = vmatpush1.bf16.msra.mxu1 %v4981_v5  ;;  %v2765_v5 = vpack.c.bf16 %v2441_v4, %v2441_v4 }
 0x56a   :  { %2728 = vmatprep.subr.bf16.mxu0 %v5005_v9  ;;  %2778 = vmatprep.subr.bf16.mxu1 %v4999_v8 }
 0x56b   :  { %v2769_v9 = vrot.slane %v2765_v5, 1 }
 0x56d   :  { %2729 = vmatpush1.bf16.msra.mxu0 %v5015_v10  ;;  %2779 = vmatpush1.bf16.msra.mxu1 %v5010_v13 }
 0x56e   :  { %2730 = vmatprep.subr.bf16.mxu0 %v5028_v14  ;;  %2780 = vmatprep.subr.bf16.mxu1 %v5021_v12 }
 0x571   :  { %2731 = vmatpush1.bf16.msra.mxu0 %v5042_v16  ;;  %2781 = vmatpush1.bf16.msra.mxu1 %v5034_v15 }
 0x572   :  { %2732 = vmatprep.subr.bf16.mxu0 %v5055_v18  ;;  %2782 = vmatprep.subr.bf16.mxu1 %v5050_v17  ;;  %v2821_v18 = vsub.s32 5, %v4353_v11 }
 0x573   :  { %v2424_v29 = vpop.f32.mrf.mxu1 }
 0x574   :  { %v2425_v59 = vadd.f32 %v2424_v29, %v2335_v41 }
 0x575   :  { %v3833_v60 = vpop.f32.mrf.mxu1  ;;  %2733 = vmatpush1.bf16.msra.mxu0 %v5065_v20  ;;  %2783 = vmatpush1.bf16.msra.mxu1 %v5060_v19 }
 0x576   :  { %v2431_v61 = vadd.f32 %v2425_v59, %v2213_v44  ;;  %2734 = vmatprep.subr.bf16.mxu0 %v5079_v22  ;;  %2784 = vmatprep.subr.bf16.mxu1 %v5074_v21  ;;  %v2822_v21 = vrot.slane %v5124_v43, %v2821_v18 }
 0x577   :  { %v2427_v62 = vpop.f32.mrf.mxu1 }
 0x578   :  { %v2433_v1 = vmax.f32 %v2431_v61, 0.0  ;;  %v2428_v63 = vadd.f32 %v2427_v62, %v2338_v49 }
 0x579   :  { %v3834_v0 = vpop.f32.mrf.mxu1  ;;  %2735 = vmatpush1.bf16.msra.mxu0 %v5089_v24  ;;  %2785 = vmatpush1.bf16.msra.mxu1 %v5084_v23  ;;  %v2826_v23 = vrot.slane %v4810_v57, %v2821_v18 }
 0x57a   :  { %2437 = vst [vmem:[#allocation3 + $0x2] sm:$0xff] %v2433_v1  ;;  %v2432_v2 = vadd.f32 %v2428_v63, %v2213_v44  ;;  %2736 = vmatprep.subr.bf16.mxu0 %v5103_v26  ;;  %2786 = vmatprep.subr.bf16.mxu1 %v5098_v25 }
 0x57c   :  { %v2434_v3 = vmax.f32 %v2432_v2, 0.0 }
 0x57d   :  { %2737 = vmatpush1.bf16.msra.mxu0 %v5113_v28  ;;  %2787 = vmatpush1.bf16.msra.mxu1 %v5108_v27 }
 0x57e   :  { %2438 = vst [vmem:[#allocation3 + $0xa] sm:$0x3f] %v2434_v3 }
 0x581   :  { %v2439_v6 = vld [vmem:[#allocation3] sm:$0xff] }
 0x585   :  { %v2440_v7 = vld [vmem:[#allocation3 + $0x8] sm:$0xff] }
 0x586   :  { %v2721_v8 = vpack.c.bf16 %v2440_v7, %v2439_v6 }
 0x588   :  { %2755 = vmatmul.mubr.bf16.vlgmr.msra.gmra.mxu0 %v2721_v8  ;;  %v2768_v13 = vrot.slane %v2721_v8, 1 }
 0x58a   :  { %v2770_v10 = vsel %vm1914_vm3, %v2768_v13, %v2769_v9 }
 0x58b   :  { %2805 = vmatmul.mubr.bf16.vlgmr.msra.gmra.mxu1 %v2770_v10 }
 0x620   :  { %v2669_v12 = vpop.f32.mrf.mxu0  ;;  %v2712_v14 = vpop.f32.mrf.mxu1 }
 0x622   :  { %v2671_v15 = vpop.f32.mrf.mxu0  ;;  %v2714_v16 = vpop.f32.mrf.mxu1 }
 0x624   :  { %v2673_v17 = vpop.f32.mrf.mxu0  ;;  %v2716_v19 = vpop.f32.mrf.mxu1 }
 0x626   :  { %v2675_v20 = vpop.f32.mrf.mxu0  ;;  %v2718_v24 = vpop.f32.mrf.mxu1 }
 0x648   :  { %v2756_v22 = vpop.f32.mrf.mxu0 }
 0x649   :  { %v2815_v25 = vadd.f32 %v2756_v22, %v2669_v12 }
 0x64a   :  { %v2758_v26 = vpop.f32.mrf.mxu0 }
 0x64b   :  { %v2827_v27 = vadd.f32 %v2822_v21, %v2815_v25  ;;  %v2816_v28 = vadd.f32 %v2758_v26, %v2671_v15  ;;  %v2806_v30 = vpop.f32.mrf.mxu1 }
 0x64c   :  { %v2839_v31 = vadd.f32 %v2806_v30, %v2712_v14  ;;  %v2760_v32 = vpop.f32.mrf.mxu0 }
 0x64d   :  { %4068 = vtanh.f32 %v2827_v27  ;;  %v2828_v33 = vadd.f32 %v2826_v23, %v2816_v28  ;;  %v2817_v34 = vadd.f32 %v2760_v32, %v2673_v17  ;;  %v2808_v35 = vpop.f32.mrf.mxu1 }
 0x64e   :  { %v2843_v11 = vadd.f32 %v2839_v31, %v2822_v21  ;;  %v2840_v36 = vadd.f32 %v2808_v35, %v2714_v16  ;;  %v2762_v37 = vpop.f32.mrf.mxu0 }
 0x64f   :  { %4070 = vtanh.f32 %v2828_v33  ;;  %v2829_v38 = vadd.f32 %v2822_v21, %v2817_v34  ;;  %v2818_v39 = vadd.f32 %v2762_v37, %v2675_v20  ;;  %v2810_v40 = vpop.f32.mrf.mxu1 }
 0x650   :  { %4072 = vtanh.f32 %v2843_v11  ;;  %v2844_v57 = vadd.f32 %v2840_v36, %v2826_v23  ;;  %v2841_v41 = vadd.f32 %v2810_v40, %v2716_v19 }
 0x651   :  { %4074 = vtanh.f32 %v2829_v38  ;;  %v2830_v42 = vadd.f32 %v2826_v23, %v2818_v39  ;;  %v2812_v43 = vpop.f32.mrf.mxu1 }
 0x652   :  { %4076 = vtanh.f32 %v2844_v57  ;;  %v2845_v44 = vadd.f32 %v2841_v41, %v2822_v21  ;;  %v2842_v45 = vadd.f32 %v2812_v43, %v2718_v24 }
 0x653   :  { %4078 = vtanh.f32 %v2830_v42 }
 0x654   :  { %4080 = vtanh.f32 %v2845_v44  ;;  %v2846_v46 = vadd.f32 %v2842_v45, %v2826_v23 }
 0x656   :  { %4082 = vtanh.f32 %v2846_v46 }
 0x65a   :  { %v4069_v47 = vpop.eup %4068 }
 0x65b   :  { %2835 = vst [vmem:[%s5195_s7] sm:$0xff] %v4069_v47 }
 0x65c   :  { %v4071_v48 = vpop.eup %4070 }
 0x65d   :  { %v4073_v49 = vpop.eup %4072  ;;  %2836 = vst [vmem:[%s5195_s7 + $0x8] sm:$0xff] %v4071_v48 }
 0x65e   :  { %v4075_v50 = vpop.eup %4074  ;;  %3311 = vst [vmem:[%s5195_s7 + $0x20] sm:$0xff] %v4073_v49 }
 0x65f   :  { %v4077_v51 = vpop.eup %4076  ;;  %2837 = vst [vmem:[%s5195_s7 + $0x10] sm:$0xff] %v4075_v50 }
 0x660   :  { %v4079_v52 = vpop.eup %4078  ;;  %3312 = vst [vmem:[%s5195_s7 + $0x28] sm:$0xff] %v4077_v51 }
 0x661   :  { %v4081_v53 = vpop.eup %4080  ;;  %2838 = vst [vmem:[%s5195_s7 + $0x18] sm:$0xff] %v4079_v52 }
 0x662   :  { %3313 = vst [vmem:[%s5195_s7 + $0x30] sm:$0xff] %v4081_v53 }
 0x663   :  { %v4083_v54 = vpop.eup %4082 }
 0x664   :  { %3314 = vst [vmem:[%s5195_s7 + $0x38] sm:$0xff] %v4083_v54 }

</bundles_post_ra>
